<compile_context>
chip_gen: v7x
topology: tpu7x:2x2x1
jax: 0.10.0
libtpu: 0.0.40
codegen_flags: <defaults>
</compile_context>

<pallas_src>
import functools

import numpy as np
import jax
import jax.numpy as jnp
from jax import lax
from jax.experimental import pallas as pl
from jax.experimental.pallas import tpu as pltpu


_MASKED_D2 = 1e12  # squared desc distance assigned to geo-masked candidates -> hinge == 0


def _round_up(x, m):
    return ((x + m - 1) // m) * m


def _pad_index(idx, n):
    """Pad an int index array to length n by repeating the first entry.

    Duplicated rows are harmless: padded anchors are masked out of the means and padded
    negatives are duplicates of a real negative (a max/min never changes under dups).
    """
    idx = np.asarray(idx).astype(np.int32).reshape(-1)
    out = np.full((n,), idx[0], np.int32)
    out[: idx.shape[0]] = idx
    return out


# ----------------------------- Pallas kernel --------------------------------

def _hardest_negative_kernel(lhs_ref, rhs_ref, out_ref, *, neg_margin, neg_thr_sq):
    """Single fused step (no grid loop needed at these sizes).

    lhs_ref : (2P, 2*Kb)  block-diagonal augmented anchors (rows 0:P dir-0, P:2P dir-1)
    rhs_ref : (2N, 2*Kb)  rows 0:N geo-augmented negatives, rows N:2N desc-augmented
    out_ref : (2P, 128)   hardest-negative hinge per anchor, broadcast across lanes
    """
    n = rhs_ref.shape[0] // 2

    # One MXU matmul yields both directions' geometric AND descriptor squared distances:
    #   prod[:, :n] = |a_xyz|^2 - 2 a_xyz.b_xyz + |b_xyz|^2
    #   prod[:, n:] = |a_d|^2   - 2 a_d.b_d     + |b_d|^2
    prod = lax.dot_general(
        lhs_ref[...], rhs_ref[...],
        dimension_numbers=(((1,), (1,)), ((), ())),
        preferred_element_type=jnp.float32,
        precision=lax.Precision.HIGHEST)                        # (2P, 2N)

    geo_d2 = prod[:, :n]                                        # lane-aligned static slice
    desc_d2 = prod[:, n:]

    # Hardest negative == smallest geo-masked descriptor distance; relu(m - sqrt(.)) is
    # monotone, so sqrt + hinge only touch the (2P, 1) reduction, never the (2P, N) tile.
    cand = jnp.where(geo_d2 > neg_thr_sq, desc_d2, _MASKED_D2)
    min_d2 = jnp.min(cand, axis=-1, keepdims=True)              # (2P, 1)  XLU reduce
    hinge = jnp.maximum(neg_margin - jnp.sqrt(jnp.maximum(min_d2, 0.0)), 0.0)

    out_ref[...] = jnp.broadcast_to(hinge, out_ref.shape)       # lane-dense store


# --------------------- fused block-diagonal operand builders -----------------

def _lhs_block(xyz, desc):
    """[xyz, |xyz|^2, 1, desc, |desc|^2, 1]  -> (P, Kb)"""
    xs = jnp.sum(xyz * xyz, axis=-1, keepdims=True)
    ds = jnp.sum(desc * desc, axis=-1, keepdims=True)
    one = jnp.ones_like(xs)
    return jnp.concatenate([xyz, xs, one, desc, ds, one], axis=-1)


def _rhs_geo_block(xyz, d_dim):
    """[-2*xyz, 1, |xyz|^2, zeros(D+2)] -> (N, Kb)"""
    xs = jnp.sum(xyz * xyz, axis=-1, keepdims=True)
    one = jnp.ones_like(xs)
    z = jnp.zeros((xyz.shape[0], d_dim + 2), xyz.dtype)
    return jnp.concatenate([-2.0 * xyz, one, xs, z], axis=-1)


def _rhs_desc_block(desc, c_dim):
    """[zeros(C+2), -2*desc, 1, |desc|^2] -> (N, Kb)"""
    ds = jnp.sum(desc * desc, axis=-1, keepdims=True)
    one = jnp.ones_like(ds)
    z = jnp.zeros((desc.shape[0], c_dim + 2), desc.dtype)
    return jnp.concatenate([z, -2.0 * desc, one, ds], axis=-1)


# ------------------------- wrapper around pallas_call ------------------------

@functools.partial(jax.jit,
                   static_argnames=("pos_margin", "neg_margin", "neg_threshold"))
def hardest_contrastive_components(anc_xyz1, anc_xyz2, anc_d1, anc_d2,
                                   neg_xyz1, neg_xyz2, neg_d1, neg_d2,
                                   sal1, sal2, valid, n_valid,
                                   *, pos_margin, neg_margin, neg_threshold):
    p, d_dim = anc_d1.shape
    c_dim = anc_xyz1.shape[1]

    # Fused operands: a handful of concats, built once per (fixed) shape bucket.
    blk1 = _lhs_block(anc_xyz1, anc_d1)                                       # (P, Kb)
    blk2 = _lhs_block(anc_xyz2, anc_d2)
    zeros_blk = jnp.zeros_like(blk1)
    lhs = jnp.concatenate(
        [jnp.concatenate([blk1, zeros_blk], axis=-1),
         jnp.concatenate([zeros_blk, blk2], axis=-1)], axis=0)                # (2P, 2Kb)

    # Direction 0 pairs anchors-1 with negatives-2; direction 1 the symmetric one.
    rhs_geo = jnp.concatenate([_rhs_geo_block(neg_xyz2, d_dim),
                               _rhs_geo_block(neg_xyz1, d_dim)], axis=-1)     # (N, 2Kb)
    rhs_desc = jnp.concatenate([_rhs_desc_block(neg_d2, c_dim),
                                _rhs_desc_block(neg_d1, c_dim)], axis=-1)     # (N, 2Kb)
    rhs = jnp.concatenate([rhs_geo, rhs_desc], axis=0)                        # (2N, 2Kb)

    kernel = functools.partial(_hardest_negative_kernel,
                               neg_margin=float(neg_margin),
                               neg_thr_sq=float(neg_threshold) ** 2)

    slab = pl.pallas_call(
        kernel,
        grid=(1,),
        in_specs=[pl.BlockSpec(lhs.shape, lambda i: (0, 0)),
                  pl.BlockSpec(rhs.shape, lambda i: (0, 0))],
        out_specs=pl.BlockSpec((2 * p, 128), lambda i: (0, 0)),
        out_shape=jax.ShapeDtypeStruct((2 * p, 128), jnp.float32),
        compiler_params=pltpu.CompilerParams(
            dimension_semantics=("arbitrary",)),
    )(lhs, rhs)

    neg_all = slab[:, 0]
    neg1, neg2 = neg_all[:p], neg_all[p:]

    # Positive loss + saliency terms + masked means: tiny (P x D), plain JAX in same jit.
    pos = jax.nn.relu(jnp.linalg.norm(anc_d1 - anc_d2, axis=-1) - pos_margin)
    det = (neg1 + pos) / sal1 + (neg2 + pos) / sal2 + jnp.log(sal1) + jnp.log(sal2)

    det_loss = jnp.sum(det * valid) / n_valid
    pos_loss = jnp.sum(pos * valid) / n_valid
    neg_loss = jnp.sum((neg1 + neg2) * valid) / n_valid
    desc_loss = pos_loss * 2.0 + neg_loss
    return pos_loss, neg_loss, det_loss, desc_loss


# ------------------------------ Module wrapper -------------------------------

class HardestContrastiveLossPallas:
    def __init__(self, pos_threshold, neg_threshold, pos_margin=0.1, neg_margin=1.4,
                 num_pos=64, num_neg=512, seed=0):
        self.num_neg = num_neg
        self.num_pos = num_pos
        self.pos_threshold = float(pos_threshold)
        self.neg_threshold = float(neg_threshold)
        self.pos_margin = float(pos_margin)
        self.neg_margin = float(neg_margin)
        self.weight_det_loss = 1.0
        self._rng = np.random.default_rng(seed)

    # TODO(synk): cKDTree.query(..., distance_upper_bound=pos_threshold) has no Pallas
    # equivalent; the PyTorch original also runs this on the host (.cpu().numpy()).
    def get_correspondences(self, source, target):
        a = np.asarray(source)
        b = np.asarray(target)
        d = np.linalg.norm(a[:, None, :] - b[None, :, :], axis=-1)
        ind2 = np.argmin(d, axis=1)
        dist = d[np.arange(a.shape[0]), ind2]
        ind1 = np.argwhere(dist <= self.pos_threshold)
        indices = np.concatenate([ind1, ind2[ind1]], axis=-1)
        return indices.astype(np.int64)

    # Deterministic stand-in for torch.randperm.
    def random_sample(self, n, nsample):
        if n > nsample:
            return self._rng.permutation(n)[:nsample]
        return np.arange(n)

    def forward(self, trans, xyz1, xyz2, desc1, desc2, sal1, sal2,
                negative_from_anchors=True, sample_negative_from_matches=True,
                use_pallas=True):
        f32 = jnp.float32
        trans = jnp.asarray(trans, f32)
        xyz1 = jnp.asarray(xyz1, f32)
        xyz2 = jnp.asarray(xyz2, f32) @ trans[:3, :3].T + trans[:3, -1:].T
        desc1, desc2 = jnp.asarray(desc1, f32), jnp.asarray(desc2, f32)
        sal1, sal2 = jnp.asarray(sal1, f32), jnp.asarray(sal2, f32)

        matches = self.get_correspondences(xyz1, xyz2)
        matches = matches[self.random_sample(matches.shape[0], self.num_pos)]
        p_real = matches.shape[0]
        if p_real == 0:
            # TODO(synk): the PyTorch original also cannot handle zero correspondences.
            z = jnp.float32(0.0)
            return {'loss': z, 'desc_loss': z, 'pos_loss': z, 'neg_loss': z, 'det_loss': z}
        i1, i2 = matches[:, 0], matches[:, 1]

        # Negative index arrays + the arrays they index into (mirrors the torch branches).
        if negative_from_anchors:
            n1_idx, n1_xyz_src, n1_desc_src = i1, xyz1, desc1
            n2_idx, n2_xyz_src, n2_desc_src = i2, xyz2, desc2
        elif sample_negative_from_matches:
            n1_idx, n1_xyz_src, n1_desc_src = i1, xyz1, desc1
            n2_idx, n2_xyz_src, n2_desc_src = i2, xyz1, desc1
        else:
            n1_idx, n1_xyz_src, n1_desc_src = np.arange(xyz1.shape[0]), xyz1, desc1
            n2_idx, n2_xyz_src, n2_desc_src = np.arange(xyz2.shape[0]), xyz2, desc2

        if n1_idx.shape[0] > self.num_neg:
            n1_idx = n1_idx[self.random_sample(n1_idx.shape[0], self.num_neg)]
            n2_idx = n2_idx[self.random_sample(n2_idx.shape[0], self.num_neg)]

        if use_pallas:
            # Fixed shape buckets (no retrace as the match count varies).
            p_pad = _round_up(max(self.num_pos, p_real), 8)
            n_pad = _round_up(max(n1_idx.shape[0], n2_idx.shape[0], 128), 128)
            a1, a2 = _pad_index(i1, p_pad), _pad_index(i2, p_pad)
            n1, n2 = _pad_index(n1_idx, n_pad), _pad_index(n2_idx, n_pad)
            valid = jnp.asarray((np.arange(p_pad) < p_real).astype(np.float32))

            pos_loss, neg_loss, det_loss, desc_loss = hardest_contrastive_components(
                xyz1[a1], xyz2[a2], desc1[a1], desc2[a2],
                n1_xyz_src[n1], n2_xyz_src[n2], n1_desc_src[n1], n2_desc_src[n2],
                jnp.squeeze(sal1[a1], -1), jnp.squeeze(sal2[a2], -1),
                valid, jnp.float32(p_real),
                pos_margin=self.pos_margin, neg_margin=self.neg_margin,
                neg_threshold=self.neg_threshold)
        else:
            # Pure-JAX reference (mirrors the torch code literally, no padding).
            anc_xyz1, anc_d1, s1 = xyz1[i1], desc1[i1], jnp.squeeze(sal1[i1], -1)
            anc_xyz2, anc_d2, s2 = xyz2[i2], desc2[i2], jnp.squeeze(sal2[i2], -1)
            neg_xyz1, neg_d1 = n1_xyz_src[n1_idx], n1_desc_src[n1_idx]
            neg_xyz2, neg_d2 = n2_xyz_src[n2_idx], n2_desc_src[n2_idx]

            def edist(src, tar):
                return jnp.linalg.norm(src[:, None, :] - tar[None, :, :], axis=-1)

            mask1 = (edist(anc_xyz1, neg_xyz2) > self.neg_threshold).astype(jnp.float32)
            mask2 = (edist(anc_xyz2, neg_xyz1) > self.neg_threshold).astype(jnp.float32)
            dl1 = jax.nn.relu(self.neg_margin - edist(anc_d1, neg_d2))
            dl2 = jax.nn.relu(self.neg_margin - edist(anc_d2, neg_d1))
            pos = jax.nn.relu(jnp.linalg.norm(anc_d1 - anc_d2, axis=-1) - self.pos_margin)
            neg1 = jnp.max(dl1 * mask1, axis=-1)
            neg2 = jnp.max(dl2 * mask2, axis=-1)
            det = (neg1 + pos) / s1 + (neg2 + pos) / s2 + jnp.log(s1) + jnp.log(s2)
            det_loss = jnp.mean(det)
            pos_loss = jnp.mean(pos)
            neg_loss = jnp.mean(neg1 + neg2)
            desc_loss = pos_loss * 2.0 + neg_loss

        return {'loss': desc_loss + det_loss * self.weight_det_loss,
                'desc_loss': desc_loss, 'pos_loss': pos_loss,
                'neg_loss': neg_loss, 'det_loss': det_loss}


# ---------------------------------- main -------------------------------------

if __name__ == "__main__":
    key = jax.random.PRNGKey(0)
    k1, k2, k3, k4, k5, k6 = jax.random.split(key, 6)

    M, D = 96, 32                                     # points per cloud, descriptor dim
    xyz1 = jax.random.uniform(k1, (M, 3), jnp.float32, minval=0.0, maxval=5.0)
    xyz2 = xyz1 + 0.02 * jax.random.normal(k2, (M, 3), jnp.float32)   # noisy copies => matches
    desc1 = jax.random.normal(k3, (M, D), jnp.float32)
    desc1 = desc1 / jnp.linalg.norm(desc1, axis=-1, keepdims=True)
    desc2 = desc1 + 0.3 * jax.random.normal(k4, (M, D), jnp.float32)
    desc2 = desc2 / jnp.linalg.norm(desc2, axis=-1, keepdims=True)
    sal1 = jax.random.uniform(k5, (M, 1), jnp.float32, minval=0.5, maxval=1.5)
    sal2 = jax.random.uniform(k6, (M, 1), jnp.float32, minval=0.5, maxval=1.5)
    trans = jnp.eye(4, dtype=jnp.float32)

    # Pallas path and pure-JAX reference path share identical (deterministic) sampling.
    loss_pallas = HardestContrastiveLossPallas(pos_threshold=0.1, neg_threshold=0.5, seed=0)
    loss_ref = HardestContrastiveLossPallas(pos_threshold=0.1, neg_threshold=0.5, seed=0)

    out = loss_pallas.forward(trans, xyz1, xyz2, desc1, desc2, sal1, sal2, use_pallas=True)
    ref = loss_ref.forward(trans, xyz1, xyz2, desc1, desc2, sal1, sal2, use_pallas=False)

    jax.block_until_ready(out['loss'])
    jax.block_until_ready(ref['loss'])

    for name in ('loss', 'desc_loss', 'pos_loss', 'neg_loss', 'det_loss'):
        np.testing.assert_allclose(np.asarray(out[name]), np.asarray(ref[name]),
                                   rtol=1e-3, atol=1e-3)

    print("KERNEL_OK")
</pallas_src>

<mosaic_0001>
module attributes {stable_mosaic.version = 11 : i64} {
  func.func @_hardest_negative_kernel(%arg0: i32, %arg1: memref<128x78xf32, #tpu.memory_space<vmem>>, %arg2: memref<256x78xf32, #tpu.memory_space<vmem>>, %arg3: memref<128x128xf32, #tpu.memory_space<vmem>>) attributes {dimension_semantics = [#tpu.dimension_semantics<arbitrary>], iteration_bounds = array<i64: 1>, scalar_prefetch = 0 : i64, scratch_operands = 0 : i64, tpu.core_type = #tpu.core_type<tc>, window_params = [{pipeline_mode = #tpu.pipeline_mode<synchronous>, transform_indices = @transform_0, window_bounds = array<i64: 128, 78>}, {pipeline_mode = #tpu.pipeline_mode<synchronous>, transform_indices = @transform_1, window_bounds = array<i64: 256, 78>}, {pipeline_mode = #tpu.pipeline_mode<synchronous>, transform_indices = @transform_2, window_bounds = array<i64: 128, 128>}]} {
    %c0 = arith.constant 0 : index
    %c0_0 = arith.constant 0 : index
    %0 = vector.load %arg1[%c0, %c0_0] : memref<128x78xf32, #tpu.memory_space<vmem>>, vector<128x78xf32>
    %c0_1 = arith.constant 0 : index
    %c0_2 = arith.constant 0 : index
    %1 = vector.load %arg2[%c0_1, %c0_2] : memref<256x78xf32, #tpu.memory_space<vmem>>, vector<256x78xf32>
    %cst = arith.constant dense<0.000000e+00> : vector<128x256xf32>
    %2 = tpu.matmul %0, %1, %cst {dimension_numbers = #tpu.dot_dimension_numbers<[1], [1], [0], [0], [0, 0, 1, 0], [], []>, precision = #tpu.contract_precision<fp32>} : vector<128x78xf32>, vector<256x78xf32>, vector<128x256xf32> -> vector<128x256xf32>
    %3 = vector.extract_strided_slice %2 {offsets = [0, 0], sizes = [128, 128], strides = [1, 1]} : vector<128x256xf32> to vector<128x128xf32>
    %4 = vector.extract_strided_slice %2 {offsets = [0, 128], sizes = [128, 128], strides = [1, 1]} : vector<128x256xf32> to vector<128x128xf32>
    %cst_3 = arith.constant 2.500000e-01 : f32
    %5 = vector.broadcast %cst_3 : f32 to vector<128x128xf32>
    %6 = arith.cmpf ogt, %3, %5 : vector<128x128xf32>
    %cst_4 = arith.constant 9.99999995E+11 : f32
    %7 = vector.broadcast %cst_4 : f32 to vector<128x128xf32>
    %8 = arith.select %6, %4, %7 : vector<128x128xi1>, vector<128x128xf32>
    %cst_5 = arith.constant dense<0x7F800000> : vector<128xf32>
    %9 = vector.multi_reduction <minimumf>, %8, %cst_5 [1] : vector<128x128xf32> to vector<128xf32>
    %10 = vector.shape_cast %9 : vector<128xf32> to vector<128x1xf32>
    %cst_6 = arith.constant 0.000000e+00 : f32
    %11 = vector.broadcast %cst_6 : f32 to vector<128x1xf32>
    %12 = arith.maximumf %10, %11 : vector<128x1xf32>
    %13 = math.sqrt %12 : vector<128x1xf32>
    %cst_7 = arith.constant 1.400000e+00 : f32
    %14 = vector.broadcast %cst_7 : f32 to vector<128x1xf32>
    %15 = arith.subf %14, %13 : vector<128x1xf32>
    %cst_8 = arith.constant 0.000000e+00 : f32
    %16 = vector.broadcast %cst_8 : f32 to vector<128x1xf32>
    %17 = arith.maximumf %15, %16 : vector<128x1xf32>
    %18 = vector.shape_cast %17 : vector<128x1xf32> to vector<128x1xf32>
    %19 = vector.broadcast %18 : vector<128x1xf32> to vector<128x128xf32>
    %c0_9 = arith.constant 0 : index
    %c0_10 = arith.constant 0 : index
    %20 = vector.load %arg3[%c0_9, %c0_10] : memref<128x128xf32, #tpu.memory_space<vmem>>, vector<128x128xf32>
    tpu.vector_store %arg3[%c0_9, %c0_10], %19 {strides = array<i32>} : memref<128x128xf32, #tpu.memory_space<vmem>>, vector<128x128xf32>,
    return
  }
  func.func @transform_0(%arg0: i32) -> (i32, i32) {
    %c0_i32 = arith.constant 0 : i32
    %c0_i32_0 = arith.constant 0 : i32
    %c0_i32_1 = arith.constant 0 : i32
    return %c0_i32, %c0_i32_0 : i32, i32
  }
  func.func @transform_1(%arg0: i32) -> (i32, i32) {
    %c0_i32 = arith.constant 0 : i32
    %c0_i32_0 = arith.constant 0 : i32
    %c0_i32_1 = arith.constant 0 : i32
    return %c0_i32, %c0_i32_0 : i32, i32
  }
  func.func @transform_2(%arg0: i32) -> (i32, i32) {
    %c0_i32 = arith.constant 0 : i32
    %c0_i32_0 = arith.constant 0 : i32
    %c0_i32_1 = arith.constant 0 : i32
    return %c0_i32, %c0_i32_0 : i32, i32
  }
}

</mosaic_0001>

<bundles_post_ra>
// kernel: hardest_contrastive_components.1
= control target key start
LH: loop header
LB: loop body
LE: loop exit
PB: predicated region body
PF: predicated region fallthrough
CT: control target
= control target key end

     0   :  { %vm59_vm0 = vcmask 637952   ;;  %s3906_s1 = inlined_call_operand.vmem [shape: f32[256,78], index: 1, kind: input, shape index: {}]   ;;  %s3907_s0 = inlined_call_operand.vmem [shape: f32[128,78], index: 0, kind: input, shape index: {}]   ;;  %s3908_s2 = inlined_call_operand.vmem [shape: f32[128,128], index: 2, kind: output, shape index: {}]  }
   0x1   :  { %v43_v0 = vld [vmem:[%s3906_s1 + $0x80] sm:$0xff]  ;;  %v44_v1 = vld [vmem:[%s3906_s1 + $0x88] sm:$0xff]  ;;  %v45_v7 = vld [vmem:[%s3906_s1 + $0x90] sm:$0xff] }
   0x2   :  { %v27_v2 = vld [vmem:[%s3906_s1] sm:$0xff]  ;;  %v2831_v3 = vsel %vm59_vm0, %v43_v0, 0  ;;  %v2834_v4 = vsel %vm59_vm0, %v44_v1, 0  ;;  %v28_v5 = vld [vmem:[%s3906_s1 + $0x8] sm:$0xff]  ;;  %v46_v8 = vld [vmem:[%s3906_s1 + $0x98] sm:$0xff]  ;;  %v2859_v15 = vsel %vm59_vm0, %v45_v7, 0 }
   0x3   :  { %v2840_v6 = vsel %vm59_vm0, %v27_v2, 0  ;;  %v253_v9 = vand.u32 4294901760, %v2831_v3  ;;  %v256_v10 = vand.u32 4294901760, %v2834_v4  ;;  %v2851_v11 = vsel %vm59_vm0, %v28_v5, 0  ;;  %v29_v13 = vld [vmem:[%s3906_s1 + $0x10] sm:$0xff]  ;;  %v30_v17 = vld [vmem:[%s3906_s1 + $0x18] sm:$0xff] }
   0x4   :  { %v205_v12 = vand.u32 4294901760, %v2840_v6  ;;  %v208_v14 = vand.u32 4294901760, %v2851_v11  ;;  %v2862_v16 = vsel %vm59_vm0, %v46_v8, 0  ;;  %v47_v18 = vld [vmem:[%s3906_s1 + $0xa0] sm:$0xff]  ;;  %v48_v19 = vld [vmem:[%s3906_s1 + $0xa8] sm:$0xff]  ;;  %v2880_v21 = vsel %vm59_vm0, %v29_v13, 0 }
   0x5   :  { %v2877_v20 = vpack.c.bf16 %v256_v10, %v253_v9  ;;  %v259_v23 = vand.u32 4294901760, %v2859_v15  ;;  %v262_v24 = vand.u32 4294901760, %v2862_v16  ;;  %v2893_v25 = vsel %vm59_vm0, %v30_v17, 0  ;;  %v31_v33 = vld [vmem:[%s3906_s1 + $0x20] sm:$0xff]  ;;  %v32_v34 = vld [vmem:[%s3906_s1 + $0x28] sm:$0xff]  ;;  %v49_v35 = vld [vmem:[%s3906_s1 + $0xb0] sm:$0xff] }
   0x6   :  { %v2886_v22 = vpack.c.bf16 %v208_v14, %v205_v12  ;;  %v2896_v26 = vsel %vm59_vm0, %v47_v18, 0  ;;  %v2899_v27 = vsel %vm59_vm0, %v48_v19, 0  ;;  %v211_v29 = vand.u32 4294901760, %v2880_v21  ;;  %v50_v36 = vld [vmem:[%s3906_s1 + $0xb8] sm:$0xff]  ;;  %v33_v47 = vld [vmem:[%s3906_s1 + $0x30] sm:$0xff]  ;;  %v51_v49 = vld [vmem:[%s3906_s1 + $0xc0] sm:$0xff] }
   0x7   :  { %3996 = vst [vmem:[#allocation2_spill] sm:$0xff] %v2877_v20  ;;  %2423 = vmatprep.subr.bf16.mxu1 %v2877_v20  ;;  %2519 = vmatprep.subr.bf16.mxu0 %v2877_v20  ;;  %v2907_v28 = vpack.c.bf16 %v262_v24, %v259_v23  ;;  %v214_v30 = vand.u32 4294901760, %v2893_v25  ;;  %v265_v31 = vand.u32 4294901760, %v2896_v26  ;;  %v268_v32 = vand.u32 4294901760, %v2899_v27  ;;  %v34_v48 = vld [vmem:[%s3906_s1 + $0x38] sm:$0xff]  ;;  %v52_v50 = vld [vmem:[%s3906_s1 + $0xc8] sm:$0xff] }
   0x8   :  { %3997 = vst [vmem:[#allocation3_spill] sm:$0xff] %v2886_v22  ;;  %2425 = vmatpush3.bf16.xpose.msra.mxu1 %v2886_v22  ;;  %2521 = vmatpush3.bf16.xpose.msra.mxu0 %v2886_v22  ;;  %v2940_v39 = vsel %vm59_vm0, %v31_v33, 0  ;;  %v2943_v40 = vsel %vm59_vm0, %v32_v34, 0  ;;  %v2946_v41 = vsel %vm59_vm0, %v49_v35, 0  ;;  %v2949_v42 = vsel %vm59_vm0, %v50_v36, 0  ;;  %v11_v61 = vld [vmem:[%s3907_s0] sm:$0xff] }
   0x9   :  { %3998 = vst [vmem:[#allocation4_spill] sm:$0xff] %v2907_v28  ;;  %2427 = vmatprep.subr.bf16.mxu1 %v2907_v28  ;;  %2523 = vmatprep.subr.bf16.mxu0 %v2907_v28  ;;  %v2931_v37 = vpack.c.bf16 %v214_v30, %v211_v29  ;;  %v2937_v38 = vpack.c.bf16 %v268_v32, %v265_v31  ;;  %v217_v43 = vand.u32 4294901760, %v2940_v39  ;;  %v3919_v44 = vand.u32 4294901760, %v2943_v40  ;;  %v35_v62 = vld [vmem:[%s3906_s1 + $0x40] sm:$0xff]  ;;  %v36_v63 = vld [vmem:[%s3906_s1 + $0x48] sm:$0xff]  ;;  %v53_v0 = vld [vmem:[%s3906_s1 + $0xd0] sm:$0xff] }
   0xa   :  { %v3918_v45 = vand.u32 4294901760, %v2946_v41  ;;  %v3917_v46 = vand.u32 4294901760, %v2949_v42  ;;  %v2984_v53 = vsel %vm59_vm0, %v33_v47, 0  ;;  %v2987_v54 = vsel %vm59_vm0, %v34_v48, 0  ;;  %v54_v1 = vld [vmem:[%s3906_s1 + $0xd8] sm:$0xff]  ;;  %v37_v48 = vld [vmem:[%s3906_s1 + $0x50] sm:$0xff] }
   0xb   :  { %3999 = vst [vmem:[#allocation5_spill] sm:$0xff] %v2931_v37  ;;  %4000 = vst [vmem:[#allocation6_spill] sm:$0xff] %v2937_v38  ;;  %v2975_v51 = vpack.c.bf16 %v3919_v44, %v217_v43  ;;  %v2990_v55 = vsel %vm59_vm0, %v51_v49, 0  ;;  %v2993_v56 = vsel %vm59_vm0, %v52_v50, 0  ;;  %v3916_v57 = vand.u32 4294901760, %v2984_v53  ;;  %v38_v49 = vld [vmem:[%s3906_s1 + $0x58] sm:$0xff] }
   0xc   :  { %v2981_v52 = vpack.c.bf16 %v3917_v46, %v3918_v45  ;;  %v3915_v58 = vand.u32 4294901760, %v2987_v54  ;;  %v3912_v59 = vand.u32 4294901760, %v2990_v55  ;;  %v3909_v60 = vand.u32 4294901760, %v2993_v56 }
   0xd   :  { %4001 = vst [vmem:[#allocation7_spill] sm:$0xff] %v2975_v51  ;;  %v61_v5 = vsel %vm59_vm0, %v11_v61, 0  ;;  %v3032_v8 = vsel %vm59_vm0, %v35_v62, 0  ;;  %v3035_v13 = vsel %vm59_vm0, %v36_v63, 0  ;;  %v3038_v17 = vsel %vm59_vm0, %v53_v0, 0  ;;  %v55_v61 = vld [vmem:[%s3906_s1 + $0xe0] sm:$0xff] }
   0xe   :  { %4002 = vst [vmem:[#allocation8_spill] sm:$0xff] %v2981_v52  ;;  %v3022_v2 = vpack.c.bf16 %v3915_v58, %v3916_v57  ;;  %v3029_v7 = vpack.c.bf16 %v3909_v60, %v3912_v59  ;;  %v3041_v18 = vsel %vm59_vm0, %v54_v1, 0  ;;  %v3043_v19 = vand.u32 4294901760, %v61_v5  ;;  %v56_v62 = vld [vmem:[%s3906_s1 + $0xe8] sm:$0xff]  ;;  %v57_v58 = vld [vmem:[%s3906_s1 + $0xf0] sm:$0xff]  ;;  %v58_v57 = vld [vmem:[%s3906_s1 + $0xf8] sm:$0xff] }
   0xf   :  { %v3911_v33 = vand.u32 4294901760, %v3032_v8  ;;  %v3910_v34 = vand.u32 4294901760, %v3035_v13  ;;  %v3914_v36 = vand.u32 4294901760, %v3038_v17  ;;  %v3913_v47 = vand.u32 4294901760, %v3041_v18 }
  0x10   :  { %2429 = vmatpush3.bf16.xpose.msra.mxu1 %v2931_v37  ;;  %2525 = vmatpush3.bf16.xpose.msra.mxu0 %v2931_v37  ;;  %4003 = vst [vmem:[#allocation9_spill] sm:$0xff] %v3022_v2  ;;  %4004 = vst [vmem:[#allocation10_spill] sm:$0xff] %v3029_v7  ;;  %v3050_v35 = vsub.f32 %v61_v5, %v3043_v19  ;;  %v3087_v5 = vsel %vm59_vm0, %v37_v48, 0  ;;  %v3090_v60 = vsel %vm59_vm0, %v38_v49, 0 }
  0x11   :  { %2431 = vmatprep.subr.bf16.mxu1 %v2937_v38  ;;  %2527 = vmatprep.subr.bf16.mxu0 %v2937_v38  ;;  %4005 = vst [vmem:[#allocation11_spill] sm:$0xff] %v3043_v19  ;;  %v3075_v63 = vpack.c.bf16 %v3910_v34, %v3911_v33  ;;  %v3084_v1 = vpack.c.bf16 %v3913_v47, %v3914_v36  ;;  %v3093_v34 = vsel %vm59_vm0, %v55_v61, 0  ;;  %v3096_v33 = vsel %vm59_vm0, %v56_v62, 0  ;;  %v39_v62 = vld [vmem:[%s3906_s1 + $0x60] sm:$0xff] }
  0x12   :  { %4006 = vst [vmem:[#allocation12_spill] sm:$0xff] %v3050_v35  ;;  %v3063_v50 = vand.u32 4294901760, %v3050_v35  ;;  %v235_v47 = vand.u32 4294901760, %v3087_v5  ;;  %v238_v48 = vand.u32 4294901760, %v3090_v60  ;;  %v289_v49 = vand.u32 4294901760, %v3093_v34 }
  0x13   :  { %4007 = vst [vmem:[#allocation13_spill] sm:$0xff] %v3075_v63  ;;  %4008 = vst [vmem:[#allocation14_spill] sm:$0xff] %v3084_v1  ;;  %v3920_v61 = vand.u32 4294901760, %v3096_v33  ;;  %v3118_v36 = vsub.f32 %v2831_v3, %v253_v9  ;;  %v3129_v46 = vsub.f32 %v2834_v4, %v256_v10  ;;  %v3134_v45 = vsub.f32 %v2840_v6, %v205_v12 }
  0x14   :  { %v304_v0 = vsub.f32 %v3050_v35, %v3063_v50  ;;  %2262 = vmatprep.mubr.f32.mxu0 %v3063_v50  ;;  %v3139_v3 = vsub.f32 %v2851_v11, %v208_v14  ;;  %v3141_v9 = vpack.c.bf16 %v238_v48, %v235_v47  ;;  %v3146_v44 = vsub.f32 %v2859_v15, %v259_v23 }
  0x15   :  { %v3150_v4 = vpack.c.bf16 %v3920_v61, %v289_v49  ;;  %v145_v10 = vsel %vm59_vm0, %v39_v62, 0  ;;  %v3157_v11 = vsub.f32 %v2862_v16, %v262_v24  ;;  %v3162_v12 = vsub.f32 %v2880_v21, %v211_v29  ;;  %v13_v62 = vld [vmem:[%s3907_s0 + $0x10] sm:$0xff] }
  0x16   :  { %v3098_v59 = vand.u32 4294901760, %v304_v0  ;;  %v40_v0 = vld [vmem:[%s3906_s1 + $0x68] sm:$0xff]  ;;  %4009 = vst [vmem:[#allocation15_spill] sm:$0xff] %v3141_v9  ;;  %v199_v14 = vsel %vm59_vm0, %v57_v58, 0  ;;  %v3166_v15 = vsel %vm59_vm0, %v58_v57, 0  ;;  %v3171_v23 = vsub.f32 %v2893_v25, %v214_v30 }
  0x17   :  { %4010 = vst [vmem:[#allocation16_spill] sm:$0xff] %v3150_v4  ;;  %v148_v6 = vsel %vm59_vm0, %v40_v0, 0  ;;  %v3176_v16 = vsub.f32 %v2896_v26, %v265_v31  ;;  %v3181_v21 = vsub.f32 %v2899_v27, %v268_v32  ;;  %v3186_v24 = vsub.f32 %v2940_v39, %v217_v43  ;;  %v12_v25 = vld [vmem:[%s3907_s0 + $0x8] sm:$0xff]  ;;  %v41_v39 = vld [vmem:[%s3906_s1 + $0x70] sm:$0xff] }
  0x18   :  { %2433 = vmatpush3.bf16.xpose.msra.mxu1 %v2975_v51  ;;  %2529 = vmatpush3.bf16.xpose.msra.mxu0 %v2975_v51  ;;  %v4011_v29 = vand.u32 4294901760, %v2943_v40  ;;  %v4012_v26 = vand.u32 4294901760, %v2946_v41  ;;  %v241_v27 = vand.u32 4294901760, %v145_v10  ;;  %v244_v32 = vand.u32 4294901760, %v148_v6 }
  0x19   :  { %2435 = vmatprep.subr.bf16.mxu1 %v2981_v52  ;;  %2531 = vmatprep.subr.bf16.mxu0 %v2981_v52  ;;  %v298_v43 = vand.u32 4294901760, %v3166_v15  ;;  %v592_v57 = vand.u32 4294901760, %v3118_v36  ;;  %v599_v58 = vand.u32 4294901760, %v3129_v46  ;;  %v4013_v0 = vand.u32 4294901760, %v2949_v42 }
  0x1a   :  { %2070 = vmatprep.mubr.f32.mxu1 %v3098_v59  ;;  %v3194_v30 = vsub.f32 %v2943_v40, %v4011_v29  ;;  %v3199_v31 = vsub.f32 %v2946_v41, %v4012_v26  ;;  %v295_v40 = vand.u32 4294901760, %v199_v14  ;;  %v42_v41 = vld [vmem:[%s3906_s1 + $0x78] sm:$0xff]  ;;  %v4014_v26 = vand.u32 4294901760, %v2984_v53 }
  0x1b   :  { %v3220_v29 = vsub.f32 %v2949_v42, %v4013_v0  ;;  %v4015_v35 = vand.u32 4294901760, %v2987_v54  ;;  %v4017_v42 = vand.u32 4294901760, %v2993_v56  ;;  %v3281_v52 = vsub.f32 %v3093_v34, %v289_v49 }
  0x1c   :  { %v3225_v61 = vsub.f32 %v2984_v53, %v4014_v26  ;;  %v4018_v53 = vand.u32 4294901760, %v3032_v8  ;;  %v480_v51 = vand.u32 4294901760, %v3134_v45  ;;  %v487_v38 = vand.u32 4294901760, %v3139_v3 }
  0x1d   :  { %v3241_v0 = vsub.f32 %v2993_v56, %v4017_v42  ;;  %v3258_v56 = vpack.c.bf16 %v298_v43, %v295_v40  ;;  %v593_v42 = vsub.f32 %v3118_v36, %v592_v57  ;;  %v627_v20 = vand.u32 4294901760, %v3181_v21 }
  0x1e   :  { %v3246_v26 = vsub.f32 %v3032_v8, %v4018_v53  ;;  %v600_v8 = vsub.f32 %v3129_v46, %v599_v58 }
  0x1f   :  { %4021 = vst [vmem:[#allocation18_spill] sm:$0xff] %v3258_v56  ;;  %v594_v49 = vand.u32 4294901760, %v593_v42  ;;  %v481_v42 = vsub.f32 %v3134_v45, %v480_v51 }
  0x20   :  { %2437 = vmatpush3.bf16.xpose.msra.mxu1 %v3022_v2  ;;  %2533 = vmatpush3.bf16.xpose.msra.mxu0 %v3022_v2  ;;  %v4023_v2 = vand.u32 4294901760, %v3038_v17 }
  0x21   :  { %2439 = vmatprep.subr.bf16.mxu1 %v3029_v7  ;;  %2535 = vmatprep.subr.bf16.mxu0 %v3029_v7  ;;  %v67_v7 = vsel %vm59_vm0, %v13_v62, 0  ;;  %v3278_v62 = vsub.f32 %v3090_v60, %v238_v48  ;;  %v3296_v60 = vsub.f32 %v145_v10, %v241_v27  ;;  %v3299_v48 = vsub.f32 %v148_v6, %v244_v32  ;;  %v15_v6 = vld [vmem:[%s3907_s0 + $0x20] sm:$0xff] }
  0x22   :  { %v606_v10 = vand.u32 4294901760, %v3146_v44 }
  0x23   :  { %4027 = vst [vmem:[#allocation22_spill] sm:$0xff] %v3278_v62 }
  0x28   :  { %2441 = vmatpush3.bf16.xpose.msra.mxu1 %v3075_v63  ;;  %2537 = vmatpush3.bf16.xpose.msra.mxu0 %v3075_v63 }
  0x29   :  { %2443 = vmatprep.subr.bf16.mxu1 %v3084_v1  ;;  %2539 = vmatprep.subr.bf16.mxu0 %v3084_v1  ;;  %v4016_v1 = vand.u32 4294901760, %v2990_v55 }
  0x2b   :  { %v3236_v63 = vsub.f32 %v2990_v55, %v4016_v1  ;;  %v151_v55 = vsel %vm59_vm0, %v41_v39, 0  ;;  %v154_v1 = vsel %vm59_vm0, %v42_v41, 0  ;;  %v3275_v41 = vsub.f32 %v3087_v5, %v235_v47 }
  0x2c   :  { %v247_v34 = vand.u32 4294901760, %v151_v55  ;;  %v250_v5 = vand.u32 4294901760, %v154_v1 }
  0x2d   :  { %4026 = vst [vmem:[#allocation21_spill] sm:$0xff] %v3275_v41 }
  0x30   :  { %2445 = vmatpush3.bf16.xpose.msra.mxu1 %v3141_v9  ;;  %2541 = vmatpush3.bf16.xpose.msra.mxu0 %v3141_v9  ;;  %v64_v9 = vsel %vm59_vm0, %v12_v25, 0  ;;  %v3253_v25 = vpack.c.bf16 %v244_v32, %v241_v27  ;;  %v613_v27 = vand.u32 4294901760, %v3157_v11  ;;  %v3315_v32 = vsub.f32 %v3166_v15, %v298_v43 }
  0x31   :  { %2447 = vmatprep.subr.bf16.mxu1 %v3150_v4  ;;  %2543 = vmatprep.subr.bf16.mxu0 %v3150_v4  ;;  %v3230_v4 = vsub.f32 %v2987_v54, %v4015_v35  ;;  %v4019_v54 = vand.u32 4294901760, %v3035_v13  ;;  %v3262_v53 = vand.u32 4294901760, %v64_v9 }
  0x32   :  { %4020 = vst [vmem:[#allocation17_spill] sm:$0xff] %v3253_v25  ;;  %4033 = vst [vmem:[#allocation27_spill] sm:$0xff] %v3315_v32 }
  0x33   :  { %v3251_v35 = vsub.f32 %v3035_v13, %v4019_v54  ;;  %4022 = vst [vmem:[#allocation19_spill] sm:$0xff] %v3262_v53  ;;  %v3267_v13 = vsub.f32 %v3038_v17, %v4023_v2  ;;  %v4025_v54 = vand.u32 4294901760, %v3041_v18  ;;  %v3285_v2 = vand.u32 4294901760, %v67_v7  ;;  %v14_v17 = vld [vmem:[%s3907_s0 + $0x18] sm:$0xff] }
  0x34   :  { %v3304_v37 = vsub.f32 %v64_v9, %v3262_v53  ;;  %v488_v9 = vsub.f32 %v3139_v3, %v487_v38 }
  0x35   :  { %4024 = vst [vmem:[#allocation20_spill] sm:$0xff] %v3267_v13  ;;  %v3272_v39 = vsub.f32 %v3041_v18, %v4025_v54  ;;  %4028 = vst [vmem:[#allocation23_spill] sm:$0xff] %v3285_v2  ;;  %v4029_v18 = vand.u32 4294901760, %v3096_v33  ;;  %v601_v54 = vand.u32 4294901760, %v600_v8  ;;  %v3324_v8 = vsub.f32 %v151_v55, %v247_v34  ;;  %v17_v55 = vld [vmem:[%s3907_s0 + $0x30] sm:$0xff] }
  0x36   :  { %4031 = vst [vmem:[#allocation25_spill] sm:$0xff] %v3304_v37  ;;  %v3331_v43 = vand.u32 4294901760, %v3304_v37  ;;  %v79_v19 = vsel %vm59_vm0, %v17_v55, 0 }
  0x37   :  { %v3293_v47 = vsub.f32 %v3096_v33, %v4029_v18  ;;  %v3306_v33 = vsub.f32 %v199_v14, %v295_v40  ;;  %v70_v18 = vsel %vm59_vm0, %v14_v17, 0  ;;  %v3320_v14 = vsub.f32 %v67_v7, %v3285_v2  ;;  %4036 = vst [vmem:[#allocation30_spill] sm:$0xff] %v3324_v8 }
  0x38   :  { %2449 = vmatpush3.bf16.xpose.msra.mxu1 %v3253_v25  ;;  %2545 = vmatpush3.bf16.xpose.msra.mxu0 %v3253_v25  ;;  %v3322_v40 = vpack.c.bf16 %v250_v5, %v247_v34  ;;  %v494_v17 = vand.u32 4294901760, %v3162_v12  ;;  %v16_v25 = vld [vmem:[%s3907_s0 + $0x28] sm:$0xff]  ;;  %v2454_v15 = vpack.c.bf16 %v601_v54, %v594_v49  ;;  %v3333_v28 = vand.u32 4294901760, %v70_v18 }
  0x39   :  { %4030 = vst [vmem:[#allocation24_spill] sm:$0xff] %v3293_v47  ;;  %2451 = vmatprep.subr.bf16.mxu1 %v3258_v56  ;;  %2547 = vmatprep.subr.bf16.mxu0 %v3258_v56  ;;  %4032 = vst [vmem:[#allocation26_spill] sm:$0xff] %v3306_v33  ;;  %v2550_v56 = vpack.c.bf16 %v599_v58, %v592_v57  ;;  %v73_v7 = vsel %vm59_vm0, %v15_v6, 0  ;;  %v3339_v34 = vsub.f32 %v154_v1, %v250_v5 }
  0x3a   :  { %4034 = vst [vmem:[#allocation28_spill] sm:$0xff] %v3320_v14  ;;  %4035 = vst [vmem:[#allocation29_spill] sm:$0xff] %v3322_v40  ;;  %v607_v57 = vsub.f32 %v3146_v44, %v606_v10  ;;  %v614_v58 = vsub.f32 %v3157_v11, %v613_v27  ;;  %v501_v2 = vand.u32 4294901760, %v3171_v23  ;;  %v482_v49 = vand.u32 4294901760, %v481_v42 }
  0x3b   :  { %4037 = vst [vmem:[#allocation31_spill] sm:$0xff] %v3333_v28  ;;  %4038 = vst [vmem:[#allocation32_spill] sm:$0xff] %v3339_v34  ;;  %v489_v54 = vand.u32 4294901760, %v488_v9  ;;  %v3345_v53 = vand.u32 4294901760, %v3320_v14  ;;  %v76_v22 = vsel %vm59_vm0, %v16_v25, 0  ;;  %v2552_v6 = vpack.c.bf16 %v487_v38, %v480_v51 }
  0x3c   :  { %v495_v1 = vsub.f32 %v3162_v12, %v494_v17  ;;  %v3351_v5 = vand.u32 4294901760, %v73_v7  ;;  %v315_v42 = vsub.f32 %v3304_v37, %v3331_v43  ;;  %v3357_v9 = vsub.f32 %v70_v18, %v3333_v28 }
  0x3d   :  { %v620_v25 = vand.u32 4294901760, %v3176_v16  ;;  %v615_v38 = vand.u32 4294901760, %v614_v58  ;;  %v502_v51 = vsub.f32 %v3171_v23, %v501_v2  ;;  %v3362_v34 = vand.u32 4294901760, %v76_v22  ;;  %v18_v58 = vld [vmem:[%s3907_s0 + $0x38] sm:$0xff] }
  0x3e   :  { %4039 = vst [vmem:[#allocation33_spill] sm:$0xff] %v3351_v5  ;;  %4040 = vst [vmem:[#allocation34_spill] sm:$0xff] %v3357_v9  ;;  %v2456_v8 = vpack.c.bf16 %v489_v54, %v482_v49  ;;  %v3366_v55 = vand.u32 4294901760, %v79_v19  ;;  %v496_v37 = vand.u32 4294901760, %v495_v1  ;;  %v3369_v18 = vsub.f32 %v73_v7, %v3351_v5 }
  0x3f   :  { %4041 = vst [vmem:[#allocation35_spill] sm:$0xff] %v3362_v34  ;;  %v316_v32 = vand.u32 4294901760, %v315_v42  ;;  %v3377_v49 = vand.u32 4294901760, %v3357_v9  ;;  %v503_v1 = vand.u32 4294901760, %v502_v51  ;;  %v2556_v7 = vpack.c.bf16 %v501_v2, %v494_v17 }
  0x40   :  { %2453 = vmatpush3.bf16.xpose.msra.mxu1 %v3322_v40  ;;  %2549 = vmatpush3.bf16.xpose.msra.mxu0 %v3322_v40  ;;  %v608_v40 = vand.u32 4294901760, %v607_v57  ;;  %4042 = vst [vmem:[#allocation36_spill] sm:$0xff] %v3366_v55  ;;  %4043 = vst [vmem:[#allocation37_spill] sm:$0xff] %v3369_v18  ;;  %v19_v57 = vld [vmem:[%s3907_s0 + $0x40] sm:$0xff]  ;;  %v3390_v42 = vsub.f32 %v79_v19, %v3366_v55  ;;  %v634_v28 = vand.u32 4294901760, %v3199_v31  ;;  %v82_v2 = vsel %vm59_vm0, %v18_v58, 0 }
  0x41   :  { %2455 = vmatprep.subr.bf16.mxu1 %v2454_v15  ;;  %2551 = vmatprep.subr.bf16.mxu0 %v2550_v56  ;;  %v326_v56 = vsub.f32 %v3320_v14, %v3345_v53  ;;  %v2554_v15 = vpack.c.bf16 %v613_v27, %v606_v10  ;;  %v621_v10 = vsub.f32 %v3176_v16, %v620_v25  ;;  %v3396_v17 = vand.u32 4294901760, %v3369_v18 }
  0x42   :  { %v628_v27 = vsub.f32 %v3181_v21, %v627_v20  ;;  %v2458_v54 = vpack.c.bf16 %v615_v38, %v608_v40  ;;  %v3382_v14 = vsub.f32 %v76_v22, %v3362_v34  ;;  %4045 = vst [vmem:[#allocation39_spill] sm:$0xff] %v3390_v42  ;;  %v641_v40 = vand.u32 4294901760, %v3220_v29 }
  0x43   :  { %v327_v22 = vand.u32 4294901760, %v326_v56  ;;  %v4046_v38 = vand.u32 4294901760, %v3186_v24  ;;  %v337_v51 = vsub.f32 %v3357_v9, %v3377_v49  ;;  %v85_v56 = vsel %vm59_vm0, %v19_v57, 0  ;;  %v20_v9 = vld [vmem:[%s3907_s0 + $0x48] sm:$0xff] }
  0x44   :  { %4044 = vst [vmem:[#allocation38_spill] sm:$0xff] %v3382_v14  ;;  %v3409_v58 = vand.u32 4294901760, %v3382_v14  ;;  %v2460_v34 = vpack.c.bf16 %v503_v1, %v496_v37  ;;  %v635_v57 = vsub.f32 %v3199_v31, %v634_v28  ;;  %v4048_v33 = vand.u32 4294901760, %v3225_v61 }
  0x45   :  { %v4051_v1 = vand.u32 4294901760, %v3186_v24 }
  0x46   :  { %v359_v5 = vsub.f32 %v3382_v14, %v3409_v58 }
  0x47   :  { %2071 = vmatmul.mubr.f32.vlgmr.msra.gmra.mrb[0].mxu1 %v3098_v59  ;;  %2263 = vmatmul.mubr.f32.vlgmr.msra.gmra.mrb[0].mxu0 %v3063_v50  ;;  %v509_v59 = vsub.f32 %v3186_v24, %v4046_v38  ;;  %v4047_v50 = vand.u32 4294901760, %v3194_v30  ;;  %v3424_v38 = vand.u32 4294901760, %v85_v56 }
  0x48   :  { %2457 = vmatpush3.bf16.xpose.msra.mxu1 %v2456_v8  ;;  %2553 = vmatpush3.bf16.xpose.msra.mxu0 %v2552_v6  ;;  %v622_v8 = vand.u32 4294901760, %v621_v10  ;;  %v629_v6 = vand.u32 4294901760, %v628_v27  ;;  %v3417_v10 = vand.u32 4294901760, %v3390_v42  ;;  %v348_v27 = vsub.f32 %v3369_v18, %v3396_v17 }
  0x49   :  { %v516_v19 = vsub.f32 %v3194_v30, %v4047_v50  ;;  %2072 = vmatprep.mubr.f32.mxu1 %v316_v32  ;;  %2264 = vmatprep.mubr.f32.mxu0 %v3331_v43  ;;  %v3413_v50 = vand.u32 4294901760, %v82_v2  ;;  %v510_v55 = vand.u32 4294901760, %v509_v59  ;;  %v3435_v18 = vsub.f32 %v3225_v61, %v4048_v33 }
  0x4a   :  { %2459 = vmatprep.subr.bf16.mxu1 %v2458_v54  ;;  %2555 = vmatprep.subr.bf16.mxu0 %v2554_v15  ;;  %v642_v15 = vsub.f32 %v3220_v29, %v641_v40  ;;  %v2558_v54 = vpack.c.bf16 %v627_v20, %v620_v25  ;;  %v4049_v20 = vand.u32 4294901760, %v3230_v4  ;;  %v349_v33 = vand.u32 4294901760, %v348_v27 }
  0x4b   :  { %2073 = vmatmul.mubr.f32.gmra.mrb[2].mxu1 %v316_v32  ;;  %2265 = vmatmul.mubr.f32.gmra.mrb[2].mxu0 %v3331_v43  ;;  %v338_v32 = vand.u32 4294901760, %v337_v51  ;;  %v2462_v43 = vpack.c.bf16 %v629_v6, %v622_v8  ;;  %v517_v37 = vand.u32 4294901760, %v516_v19  ;;  %v3443_v59 = vsub.f32 %v82_v2, %v3413_v50 }
  0x4c   :  { %2074 = vmatprep.mubr.f32.mxu1 %v327_v22  ;;  %2266 = vmatprep.mubr.f32.mxu0 %v3345_v53  ;;  %v3440_v25 = vsub.f32 %v3230_v4, %v4049_v20  ;;  %v370_v19 = vsub.f32 %v3390_v42, %v3417_v10  ;;  %v636_v51 = vand.u32 4294901760, %v635_v57  ;;  %v643_v8 = vand.u32 4294901760, %v642_v15 }
  0x4d   :  { %4050 = vst [vmem:[#allocation40_spill] sm:$0xff] %v3443_v59  ;;  %v3968_v6 = vand.u32 4294901760, %v3241_v0  ;;  %v4052_v20 = vand.u32 4294901760, %v3194_v30  ;;  %v3454_v2 = vsub.f32 %v85_v56, %v3424_v38  ;;  %v2562_v57 = vpack.c.bf16 %v641_v40, %v634_v28 }
  0x4e   :  { %v4054_v15 = vand.u32 4294901760, %v3236_v63  ;;  %v524_v27 = vand.u32 4294901760, %v3435_v18  ;;  %v531_v56 = vand.u32 4294901760, %v3440_v25  ;;  %v371_v28 = vand.u32 4294901760, %v370_v19  ;;  %v22_v19 = vld [vmem:[%s3907_s0 + $0x58] sm:$0xff]  ;;  %v4057_v25 = vld [vmem:[#allocation26_spill] sm:$0xff] }
  0x4f   :  { %2075 = vmatmul.mubr.f32.gmra.mrb[4].mxu1 %v327_v22  ;;  %2267 = vmatmul.mubr.f32.gmra.mrb[4].mxu0 %v3345_v53  ;;  %v2560_v14 = vpack.c.bf16 %v4052_v20, %v4051_v1  ;;  %4053 = vst [vmem:[#allocation41_spill] sm:$0xff] %v3454_v2  ;;  %v88_v53 = vsel %vm59_vm0, %v20_v9, 0  ;;  %v2464_v22 = vpack.c.bf16 %v517_v37, %v510_v55  ;;  %v3466_v1 = vand.u32 4294901760, %v3443_v59  ;;  %v21_v9 = vld [vmem:[%s3907_s0 + $0x50] sm:$0xff] }
  0x50   :  { %2461 = vmatpush3.bf16.xpose.msra.mxu1 %v2460_v34  ;;  %2557 = vmatpush3.bf16.xpose.msra.mxu0 %v2556_v7  ;;  %v3461_v34 = vsub.f32 %v3236_v63, %v4054_v15  ;;  %v360_v7 = vand.u32 4294901760, %v359_v5  ;;  %v2466_v55 = vpack.c.bf16 %v643_v8, %v636_v51  ;;  %v656_v5 = vsub.f32 %v3241_v0, %v3968_v6 }
  0x51   :  { %2076 = vmatprep.mubr.f32.mxu1 %v338_v32  ;;  %2268 = vmatprep.mubr.f32.mxu0 %v3377_v49  ;;  %v3475_v40 = vand.u32 4294901760, %v88_v53  ;;  %v3479_v18 = vand.u32 4294901760, %v3454_v2  ;;  %v91_v37 = vsel %vm59_vm0, %v21_v9, 0  ;;  %v381_v51 = vsub.f32 %v3443_v59, %v3466_v1 }
  0x52   :  { %2463 = vmatprep.subr.bf16.mxu1 %v2462_v43  ;;  %2559 = vmatprep.subr.bf16.mxu0 %v2558_v54  ;;  %v3967_v54 = vand.u32 4294901760, %v3246_v26  ;;  %v650_v43 = vand.u32 4294901760, %v3461_v34  ;;  %v657_v34 = vand.u32 4294901760, %v656_v5  ;;  %v3510_v15 = vand.u32 4294901760, %v91_v37  ;;  %v4059_v5 = vld [vmem:[#allocation30_spill] sm:$0xff] }
  0x53   :  { %2077 = vmatmul.mubr.f32.gmra.mrb[6].mxu1 %v338_v32  ;;  %2269 = vmatmul.mubr.f32.gmra.mrb[6].mxu0 %v3377_v49  ;;  %v3969_v32 = vand.u32 4294901760, %v3251_v35  ;;  %v3501_v9 = vsub.f32 %v88_v53, %v3475_v40  ;;  %v23_v53 = vld [vmem:[%s3907_s0 + $0x60] sm:$0xff]  ;;  %v4058_v49 = vld [vmem:[#allocation27_spill] sm:$0xff]  ;;  %v2468_v20 = vpack.c.bf16 %v531_v56, %v524_v27  ;;  %v4065_v59 = vand.u32 4294901760, %v3236_v63 }
  0x54   :  { %2078 = vmatprep.mubr.f32.mxu1 %v349_v33  ;;  %2270 = vmatprep.mubr.f32.mxu0 %v3396_v17  ;;  %4056 = vst [vmem:[#allocation43_spill] sm:$0xff] %v3510_v15  ;;  %v4066_v27 = vand.u32 4294901760, %v3241_v0  ;;  %v4067_v42 = vand.u32 4294901760, %v3267_v13 }
  0x55   :  { %4055 = vst [vmem:[#allocation42_spill] sm:$0xff] %v3501_v9  ;;  %v3550_v8 = vand.u32 4294901760, %v3501_v9 }
  0x56   :  { %v2566_v56 = vpack.c.bf16 %v4066_v27, %v4065_v59  ;;  %v24_v59 = vld [vmem:[%s3907_s0 + $0x68] sm:$0xff] }
  0x57   :  { %2079 = vmatmul.mubr.f32.gmra.mrb[8].mxu1 %v349_v33  ;;  %2271 = vmatmul.mubr.f32.gmra.mrb[8].mxu0 %v3396_v17  ;;  %v94_v33 = vsel %vm59_vm0, %v22_v19, 0  ;;  %v4060_v17 = vld [vmem:[#allocation32_spill] sm:$0xff]  ;;  %v544_v19 = vsub.f32 %v3251_v35, %v3969_v32  ;;  %v97_v32 = vsel %vm59_vm0, %v23_v53, 0  ;;  %v100_v27 = vsel %vm59_vm0, %v24_v59, 0 }
  0x58   :  { %2465 = vmatpush3.bf16.xpose.msra.mxu1 %v2464_v22  ;;  %2561 = vmatpush3.bf16.xpose.msra.mxu0 %v2560_v14  ;;  %v4061_v14 = vand.u32 4294901760, %v3225_v61  ;;  %v3553_v22 = vsub.f32 %v91_v37, %v3510_v15  ;;  %v3555_v6 = vand.u32 4294901760, %v94_v33 }
  0x59   :  { %2080 = vmatprep.mubr.f32.mxu1 %v360_v7  ;;  %2272 = vmatprep.mubr.f32.mxu0 %v3409_v58  ;;  %v545_v53 = vand.u32 4294901760, %v544_v19 }
  0x5a   :  { %2467 = vmatprep.subr.bf16.mxu1 %v2466_v55  ;;  %2563 = vmatprep.subr.bf16.mxu0 %v2562_v57  ;;  %v392_v57 = vsub.f32 %v3454_v2, %v3479_v18  ;;  %v537_v55 = vsub.f32 %v3246_v26, %v3967_v54  ;;  %4063 = vst [vmem:[#allocation26_spill] sm:$0xff] %v3553_v22  ;;  %v382_v54 = vand.u32 4294901760, %v381_v51  ;;  %4064 = vst [vmem:[#allocation27_spill] sm:$0xff] %v3555_v6 }
  0x5b   :  { %2081 = vmatmul.mubr.f32.gmra.mrb[10].mxu1 %v360_v7  ;;  %2273 = vmatmul.mubr.f32.gmra.mrb[10].mxu0 %v3409_v58  ;;  %v4062_v7 = vand.u32 4294901760, %v3230_v4  ;;  %v2470_v2 = vpack.c.bf16 %v657_v34, %v650_v43  ;;  %v550_v43 = vand.u32 4294901760, %v3275_v41  ;;  %v3576_v34 = vand.u32 4294901760, %v3553_v22 }
  0x5c   :  { %2082 = vmatprep.mubr.f32.mxu1 %v371_v28  ;;  %2274 = vmatprep.mubr.f32.mxu0 %v3417_v10  ;;  %v393_v51 = vand.u32 4294901760, %v392_v57  ;;  %v538_v15 = vand.u32 4294901760, %v537_v55  ;;  %v3583_v57 = vsub.f32 %v94_v33, %v3555_v6  ;;  %v4071_v33 = vand.u32 4294901760, %v3246_v26 }
  0x5d   :  { %v2564_v58 = vpack.c.bf16 %v4062_v7, %v4061_v14  ;;  %v663_v14 = vsub.f32 %v3267_v13, %v4067_v42  ;;  %v4068_v7 = vand.u32 4294901760, %v3272_v39  ;;  %v403_v42 = vsub.f32 %v3501_v9, %v3550_v8 }
  0x5e   :  { %4070 = vst [vmem:[#allocation32_spill] sm:$0xff] %v3583_v57  ;;  %v2472_v9 = vpack.c.bf16 %v545_v53, %v538_v15  ;;  %v4072_v55 = vand.u32 4294901760, %v3251_v35  ;;  %v4074_v15 = vand.u32 4294901760, %v3281_v52  ;;  %v4076_v6 = vand.u32 4294901760, %v3267_v13 }
  0x5f   :  { %v670_v37 = vsub.f32 %v3272_v39, %v4068_v7  ;;  %2083 = vmatmul.mubr.f32.gmra.mrb[12].mxu1 %v371_v28  ;;  %2275 = vmatmul.mubr.f32.gmra.mrb[12].mxu0 %v3417_v10  ;;  %v557_v28 = vand.u32 4294901760, %v3278_v62  ;;  %v3579_v10 = vand.u32 4294901760, %v97_v32  ;;  %v25_v7 = vld [vmem:[%s3907_s0 + $0x70] sm:$0xff] }
  0x60   :  { %2469 = vmatpush3.bf16.xpose.msra.mxu1 %v2468_v20  ;;  %2565 = vmatpush3.bf16.xpose.msra.mxu0 %v2564_v58  ;;  %v664_v20 = vand.u32 4294901760, %v663_v14  ;;  %v683_v58 = vand.u32 4294901760, %v3293_v47  ;;  %v404_v14 = vand.u32 4294901760, %v403_v42  ;;  %v677_v53 = vsub.f32 %v3281_v52, %v4074_v15 }
  0x61   :  { %4069 = vst [vmem:[#allocation30_spill] sm:$0xff] %v3579_v10  ;;  %2084 = vmatprep.mubr.f32.mxu1 %v382_v54  ;;  %2276 = vmatprep.mubr.f32.mxu0 %v3466_v1  ;;  %v671_v19 = vand.u32 4294901760, %v670_v37  ;;  %v414_v37 = vsub.f32 %v3553_v22, %v3576_v34  ;;  %v558_v59 = vsub.f32 %v3278_v62, %v557_v28  ;;  %v4077_v22 = vand.u32 4294901760, %v3272_v39 }
  0x62   :  { %2471 = vmatprep.subr.bf16.mxu1 %v2470_v2  ;;  %2567 = vmatprep.subr.bf16.mxu0 %v2566_v56  ;;  %v2568_v2 = vpack.c.bf16 %v4072_v55, %v4071_v33  ;;  %v551_v56 = vsub.f32 %v3275_v41, %v550_v43  ;;  %v3610_v55 = vand.u32 4294901760, %v100_v27  ;;  %v103_v33 = vsel %vm59_vm0, %v25_v7, 0  ;;  %v26_v7 = vld [vmem:[%s3907_s0 + $0x78] sm:$0xff] }
  0x63   :  { %2085 = vmatmul.mubr.f32.gmra.mrb[14].mxu1 %v382_v54  ;;  %2277 = vmatmul.mubr.f32.gmra.mrb[14].mxu0 %v3466_v1  ;;  %v3602_v54 = vsub.f32 %v97_v32, %v3579_v10  ;;  %v3605_v1 = vand.u32 4294901760, %v3583_v57  ;;  %v2474_v42 = vpack.c.bf16 %v671_v19, %v664_v20  ;;  %v2570_v41 = vpack.c.bf16 %v4077_v22, %v4076_v6 }
  0x64   :  { %2086 = vmatprep.mubr.f32.mxu1 %v393_v51  ;;  %2278 = vmatprep.mubr.f32.mxu0 %v3479_v18  ;;  %4075 = vst [vmem:[#allocation45_spill] sm:$0xff] %v3610_v55  ;;  %v684_v32 = vsub.f32 %v3293_v47, %v683_v58  ;;  %v552_v10 = vand.u32 4294901760, %v551_v56  ;;  %v564_v62 = vand.u32 4294901760, %v3296_v60  ;;  %v571_v15 = vand.u32 4294901760, %v3299_v48 }
  0x65   :  { %4073 = vst [vmem:[#allocation44_spill] sm:$0xff] %v3602_v54  ;;  %v415_v20 = vand.u32 4294901760, %v414_v37  ;;  %v559_v19 = vand.u32 4294901760, %v558_v59  ;;  %v435_v6 = vand.u32 4294901760, %v3602_v54  ;;  %v3625_v22 = vand.u32 4294901760, %v103_v33 }
  0x66   :  { %v3631_v56 = vsub.f32 %v100_v27, %v3610_v55  ;;  %v697_v37 = vand.u32 4294901760, %v4058_v49  ;;  %v106_v59 = vsel %vm59_vm0, %v26_v7, 0  ;;  %v2572_v47 = vpack.c.bf16 %v557_v28, %v550_v43 }
  0x67   :  { %2087 = vmatmul.mubr.f32.gmra.mrb[16].mxu1 %v393_v51  ;;  %2279 = vmatmul.mubr.f32.gmra.mrb[16].mxu0 %v3479_v18  ;;  %v425_v18 = vsub.f32 %v3583_v57, %v3605_v1  ;;  %v678_v51 = vand.u32 4294901760, %v677_v53  ;;  %v565_v13 = vsub.f32 %v3296_v60, %v564_v62  ;;  %v572_v53 = vsub.f32 %v3299_v48, %v571_v15 }
  0x68   :  { %2473 = vmatpush3.bf16.xpose.msra.mxu1 %v2472_v9  ;;  %2569 = vmatpush3.bf16.xpose.msra.mxu0 %v2568_v2  ;;  %v685_v9 = vand.u32 4294901760, %v684_v32  ;;  %v690_v2 = vand.u32 4294901760, %v4057_v25  ;;  %v2476_v27 = vpack.c.bf16 %v559_v19, %v552_v10  ;;  %v446_v7 = vand.u32 4294901760, %v3631_v56 }
  0x69   :  { %2088 = vmatprep.mubr.f32.mxu1 %v404_v14  ;;  %2280 = vmatprep.mubr.f32.mxu0 %v3550_v8  ;;  %v426_v32 = vand.u32 4294901760, %v425_v18  ;;  %v4078_v43 = vand.u32 4294901760, %v3281_v52  ;;  %v698_v55 = vsub.f32 %v4058_v49, %v697_v37  ;;  %v566_v10 = vand.u32 4294901760, %v565_v13 }
  0x6a   :  { %2475 = vmatprep.subr.bf16.mxu1 %v2474_v42  ;;  %2571 = vmatprep.subr.bf16.mxu0 %v2570_v41  ;;  %v436_v41 = vsub.f32 %v3602_v54, %v435_v6  ;;  %v3642_v42 = vsub.f32 %v103_v33, %v3625_v22  ;;  %v691_v57 = vsub.f32 %v4057_v25, %v690_v2  ;;  %v573_v19 = vand.u32 4294901760, %v572_v53 }
  0x6b   :  { %2089 = vmatmul.mubr.f32.gmra.mrb[18].mxu1 %v404_v14  ;;  %2281 = vmatmul.mubr.f32.gmra.mrb[18].mxu0 %v3550_v8  ;;  %v3645_v14 = vand.u32 4294901760, %v106_v59  ;;  %v2478_v8 = vpack.c.bf16 %v685_v9, %v678_v51  ;;  %v2574_v28 = vpack.c.bf16 %v683_v58, %v4078_v43  ;;  %v578_v54 = vand.u32 4294901760, %v4059_v5 }
  0x6c   :  { %2090 = vmatprep.mubr.f32.mxu1 %v415_v20  ;;  %2282 = vmatprep.mubr.f32.mxu0 %v3576_v34  ;;  %v437_v33 = vand.u32 4294901760, %v436_v41  ;;  %v457_v18 = vand.u32 4294901760, %v3642_v42  ;;  %v585_v51 = vand.u32 4294901760, %v4060_v17  ;;  %v447_v58 = vsub.f32 %v3631_v56, %v446_v7 }
  0x6d   :  { %v692_v13 = vand.u32 4294901760, %v691_v57  ;;  %v2576_v9 = vpack.c.bf16 %v571_v15, %v564_v62 }
  0x6e   :  { %v458_v53 = vsub.f32 %v3642_v42, %v457_v18  ;;  %v586_v41 = vsub.f32 %v4060_v17, %v585_v51  ;;  %v448_v43 = vand.u32 4294901760, %v447_v58  ;;  %v4098_v58 = vld [vmem:[#allocation8_spill] sm:$0xff] }
  0x6f   :  { %2091 = vmatmul.mubr.f32.gmra.mrb[20].mxu1 %v415_v20  ;;  %2283 = vmatmul.mubr.f32.gmra.mrb[20].mxu0 %v3576_v34  ;;  %v3658_v20 = vsub.f32 %v106_v59, %v3645_v14  ;;  %v699_v34 = vand.u32 4294901760, %v698_v55 }
  0x70   :  { %2477 = vmatpush3.bf16.xpose.msra.mxu1 %v2476_v27  ;;  %2573 = vmatpush3.bf16.xpose.msra.mxu0 %v2572_v47  ;;  %v2480_v47 = vpack.c.bf16 %v573_v19, %v566_v10  ;;  %v579_v27 = vsub.f32 %v4059_v5, %v578_v54  ;;  %v459_v57 = vand.u32 4294901760, %v458_v53  ;;  %v587_v62 = vand.u32 4294901760, %v586_v41  ;;  %v4083_v10 = vld [vmem:[#allocation3_spill] sm:$0xff]  ;;  %v4086_v19 = vld [vmem:[#allocation4_spill] sm:$0xff] }
  0x71   :  { %2092 = vmatprep.mubr.f32.mxu1 %v426_v32  ;;  %2284 = vmatprep.mubr.f32.mxu0 %v3605_v1  ;;  %v468_v59 = vand.u32 4294901760, %v3658_v20  ;;  %v4114_v53 = vld [vmem:[#allocation27_spill] sm:$0xff] }
  0x72   :  { %2479 = vmatprep.subr.bf16.mxu1 %v2478_v8  ;;  %2575 = vmatprep.subr.bf16.mxu0 %v2574_v28  ;;  %v2482_v8 = vpack.c.bf16 %v699_v34, %v692_v13  ;;  %v2578_v28 = vpack.c.bf16 %v697_v37, %v690_v2  ;;  %v4080_v37 = vld [vmem:[#allocation2_spill] sm:$0xff]  ;;  %v4099_v13 = vld [vmem:[#allocation36_spill] sm:$0xff] }
  0x73   :  { %2093 = vmatmul.mubr.f32.gmra.mrb[22].mxu1 %v426_v32  ;;  %2285 = vmatmul.mubr.f32.gmra.mrb[22].mxu0 %v3605_v1  ;;  %v580_v1 = vand.u32 4294901760, %v579_v27  ;;  %v469_v55 = vsub.f32 %v3658_v20, %v468_v59  ;;  %v2580_v32 = vpack.c.bf16 %v585_v51, %v578_v54  ;;  %v4082_v54 = vpack.c.bf16 %v3139_v3, %v3134_v45  ;;  %v4090_v3 = vld [vmem:[#allocation31_spill] sm:$0xff]  ;;  %v4093_v51 = vld [vmem:[#allocation33_spill] sm:$0xff]  ;;  %v4108_v34 = vld [vmem:[#allocation14_spill] sm:$0xff] }
  0x74   :  { %2094 = vmatprep.mubr.f32.mxu1 %v437_v33  ;;  %2286 = vmatprep.mubr.f32.mxu0 %v435_v6  ;;  %v4088_v45 = vpack.c.bf16 %v3171_v23, %v3162_v12  ;;  %v4094_v12 = vpack.c.bf16 %v3194_v30, %v3186_v24  ;;  %v4095_v23 = vld [vmem:[#allocation7_spill] sm:$0xff]  ;;  %v4100_v24 = vpack.c.bf16 %v3230_v4, %v3225_v61  ;;  %v4101_v30 = vld [vmem:[#allocation9_spill] sm:$0xff]  ;;  %v4106_v4 = vld [vmem:[#allocation20_spill] sm:$0xff] }
  0x75   :  { %v2484_v15 = vpack.c.bf16 %v587_v62, %v580_v1  ;;  %v470_v2 = vand.u32 4294901760, %v469_v55  ;;  %v4104_v61 = vpack.c.bf16 %v3251_v35, %v3246_v26  ;;  %v4110_v26 = vld [vmem:[#allocation22_spill] sm:$0xff]  ;;  %v4111_v35 = vld [vmem:[#allocation21_spill] sm:$0xff]  ;;  %v4115_v27 = vld [vmem:[#allocation24_spill] sm:$0xff] }
  0x76   :  { %v4116_v41 = vpack.c.bf16 %v4115_v27, %v3281_v52  ;;  %v4120_v52 = vld [vmem:[#allocation17_spill] sm:$0xff]  ;;  %v4123_v1 = vld [vmem:[#allocation18_spill] sm:$0xff] }
  0x77   :  { %2095 = vmatmul.mubr.f32.gmra.mrb[24].mxu1 %v437_v33  ;;  %2287 = vmatmul.mubr.f32.gmra.mrb[24].mxu0 %v435_v6  ;;  %v4079_v6 = vpack.c.bf16 %v3129_v46, %v3118_v36  ;;  %v4084_v46 = vld [vmem:[#allocation19_spill] sm:$0xff]  ;;  %v4085_v36 = vpack.c.bf16 %v3157_v11, %v3146_v44  ;;  %v4089_v44 = vld [vmem:[#allocation5_spill] sm:$0xff]  ;;  %v4091_v11 = vpack.c.bf16 %v3181_v21, %v3176_v16  ;;  %v4131_v55 = vld [vmem:[#allocation38_spill] sm:$0xff] }
  0x78   :  { %2481 = vmatpush3.bf16.xpose.msra.mxu1 %v2480_v47  ;;  %2577 = vmatpush3.bf16.xpose.msra.mxu0 %v2576_v9  ;;  %v4087_v33 = vld [vmem:[#allocation23_spill] sm:$0xff]  ;;  %v4097_v21 = vpack.c.bf16 %v3220_v29, %v3199_v31  ;;  %v4102_v31 = vpack.c.bf16 %v3241_v0, %v3236_v63  ;;  %v4103_v29 = vld [vmem:[#allocation10_spill] sm:$0xff]  ;;  %v4105_v63 = vld [vmem:[#allocation13_spill] sm:$0xff]  ;;  %v4107_v0 = vpack.c.bf16 %v3272_v39, %v4106_v4 }
  0x79   :  { %2096 = vmatprep.mubr.f32.mxu1 %v448_v43  ;;  %2288 = vmatprep.mubr.f32.mxu0 %v446_v7  ;;  %v4096_v16 = vld [vmem:[#allocation35_spill] sm:$0xff]  ;;  %v4112_v9 = vpack.c.bf16 %v4110_v26, %v4111_v35  ;;  %v4130_v62 = vld [vmem:[#allocation37_spill] sm:$0xff] }
  0x7a   :  { %2483 = vmatprep.subr.bf16.mxu1 %v2482_v8  ;;  %2579 = vmatprep.subr.bf16.mxu0 %v2578_v28  ;;  %v4109_v47 = vld [vmem:[#allocation43_spill] sm:$0xff]  ;;  %v4119_v8 = vpack.c.bf16 %v3299_v48, %v3296_v60  ;;  %v4121_v28 = vld [vmem:[#allocation45_spill] sm:$0xff]  ;;  %v4124_v60 = vpack.c.bf16 %v4060_v17, %v4059_v5  ;;  %v4128_v17 = vld [vmem:[#allocation28_spill] sm:$0xff] }
  0x7b   :  { %2097 = vmatmul.mubr.f32.gmra.mrb[26].mxu1 %v448_v43  ;;  %2289 = vmatmul.mubr.f32.gmra.mrb[26].mxu0 %v446_v7  ;;  %v4081_v7 = vld [vmem:[#allocation11_spill] sm:$0xff]  ;;  %v4117_v43 = vld [vmem:[#allocation16_spill] sm:$0xff]  ;;  %v4125_v48 = vld [vmem:[#allocation29_spill] sm:$0xff] }
  0x7c   :  { %2098 = vmatprep.mubr.f32.mxu1 %v459_v57  ;;  %2290 = vmatprep.mubr.f32.mxu0 %v457_v18  ;;  %v4113_v39 = vld [vmem:[#allocation15_spill] sm:$0xff]  ;;  %v4129_v5 = vld [vmem:[#allocation34_spill] sm:$0xff] }
  0x7f   :  { %2099 = vmatmul.mubr.f32.gmra.mrb[28].mxu1 %v459_v57  ;;  %2291 = vmatmul.mubr.f32.gmra.mrb[28].mxu0 %v457_v18  ;;  %v4092_v18 = vld [vmem:[#allocation6_spill] sm:$0xff]  ;;  %v4122_v57 = vpack.c.bf16 %v4058_v49, %v4057_v25  ;;  %v4126_v49 = vld [vmem:[#allocation12_spill] sm:$0xff]  ;;  %v4127_v25 = vld [vmem:[#allocation25_spill] sm:$0xff] }
  0x80   :  { %2485 = vmatpush3.bf16.xpose.msra.mxu1 %v2484_v15  ;;  %2581 = vmatpush3.bf16.xpose.msra.mxu0 %v2580_v32  ;;  %v4132_v15 = vld [vmem:[#allocation39_spill] sm:$0xff]  ;;  %v4133_v32 = vld [vmem:[#allocation40_spill] sm:$0xff] }
  0x81   :  { %2100 = vmatprep.mubr.f32.mxu1 %v470_v2  ;;  %2292 = vmatprep.mubr.f32.mxu0 %v468_v59 }
  0x82   :  { %2487 = vmatprep.subr.bf16.mxu1 %v4079_v6  ;;  %2583 = vmatprep.subr.bf16.mxu0 %v4080_v37  ;;  %v4135_v6 = vld [vmem:[#allocation42_spill] sm:$0xff] }
  0x83   :  { %2101 = vmatmul.mubr.f32.gmra.mrb[30].mxu1 %v470_v2  ;;  %2293 = vmatmul.mubr.f32.gmra.mrb[30].mxu0 %v468_v59  ;;  %v4118_v59 = vld [vmem:[#allocation30_spill] sm:$0xff]  ;;  %v4134_v2 = vld [vmem:[#allocation41_spill] sm:$0xff] }
  0x84   :  { %2134 = vmatprep.mubr.f32.mxu1 %v4081_v7  ;;  %2326 = vmatprep.mubr.f32.mxu0 %v4081_v7  ;;  %v4136_v37 = vld [vmem:[#allocation26_spill] sm:$0xff] }
  0x87   :  { %2135 = vmatmul.mubr.f32.vlgmr.msra.gmra.mrb[0].mxu1 %v4081_v7  ;;  %2327 = vmatmul.mubr.f32.vlgmr.msra.gmra.mrb[0].mxu0 %v4081_v7 }
  0x88   :  { %2489 = vmatpush3.bf16.xpose.msra.mxu1 %v4082_v54  ;;  %2585 = vmatpush3.bf16.xpose.msra.mxu0 %v4083_v10 }
  0x89   :  { %2136 = vmatprep.mubr.f32.mxu1 %v4084_v46  ;;  %2328 = vmatprep.mubr.f32.mxu0 %v4084_v46 }
  0x8a   :  { %2491 = vmatprep.subr.bf16.mxu1 %v4085_v36  ;;  %2587 = vmatprep.subr.bf16.mxu0 %v4086_v19 }
  0x8b   :  { %2137 = vmatmul.mubr.f32.gmra.mrb[2].mxu1 %v4084_v46  ;;  %2329 = vmatmul.mubr.f32.gmra.mrb[2].mxu0 %v4084_v46 }
  0x8c   :  { %2138 = vmatprep.mubr.f32.mxu1 %v4087_v33  ;;  %2330 = vmatprep.mubr.f32.mxu0 %v4087_v33 }
  0x8f   :  { %2139 = vmatmul.mubr.f32.gmra.mrb[4].mxu1 %v4087_v33  ;;  %2331 = vmatmul.mubr.f32.gmra.mrb[4].mxu0 %v4087_v33 }
  0x90   :  { %2493 = vmatpush3.bf16.xpose.msra.mxu1 %v4088_v45  ;;  %2589 = vmatpush3.bf16.xpose.msra.mxu0 %v4089_v44 }
  0x91   :  { %2140 = vmatprep.mubr.f32.mxu1 %v4090_v3  ;;  %2332 = vmatprep.mubr.f32.mxu0 %v4090_v3 }
  0x92   :  { %2495 = vmatprep.subr.bf16.mxu1 %v4091_v11  ;;  %2591 = vmatprep.subr.bf16.mxu0 %v4092_v18 }
  0x93   :  { %2141 = vmatmul.mubr.f32.gmra.mrb[6].mxu1 %v4090_v3  ;;  %2333 = vmatmul.mubr.f32.gmra.mrb[6].mxu0 %v4090_v3 }
  0x94   :  { %2142 = vmatprep.mubr.f32.mxu1 %v4093_v51  ;;  %2334 = vmatprep.mubr.f32.mxu0 %v4093_v51 }
  0x97   :  { %2143 = vmatmul.mubr.f32.gmra.mrb[8].mxu1 %v4093_v51  ;;  %2335 = vmatmul.mubr.f32.gmra.mrb[8].mxu0 %v4093_v51 }
  0x98   :  { %2497 = vmatpush3.bf16.xpose.msra.mxu1 %v4094_v12  ;;  %2593 = vmatpush3.bf16.xpose.msra.mxu0 %v4095_v23 }
  0x99   :  { %2144 = vmatprep.mubr.f32.mxu1 %v4096_v16  ;;  %2336 = vmatprep.mubr.f32.mxu0 %v4096_v16 }
  0x9a   :  { %2499 = vmatprep.subr.bf16.mxu1 %v4097_v21  ;;  %2595 = vmatprep.subr.bf16.mxu0 %v4098_v58 }
  0x9b   :  { %2145 = vmatmul.mubr.f32.gmra.mrb[10].mxu1 %v4096_v16  ;;  %2337 = vmatmul.mubr.f32.gmra.mrb[10].mxu0 %v4096_v16 }
  0x9c   :  { %2146 = vmatprep.mubr.f32.mxu1 %v4099_v13  ;;  %2338 = vmatprep.mubr.f32.mxu0 %v4099_v13 }
  0x9f   :  { %2147 = vmatmul.mubr.f32.gmra.mrb[12].mxu1 %v4099_v13  ;;  %2339 = vmatmul.mubr.f32.gmra.mrb[12].mxu0 %v4099_v13 }
  0xa0   :  { %2501 = vmatpush3.bf16.xpose.msra.mxu1 %v4100_v24  ;;  %2597 = vmatpush3.bf16.xpose.msra.mxu0 %v4101_v30 }
  0xa1   :  { %2148 = vmatprep.mubr.f32.mxu1 %v3413_v50  ;;  %2340 = vmatprep.mubr.f32.mxu0 %v3413_v50 }
  0xa2   :  { %2503 = vmatprep.subr.bf16.mxu1 %v4102_v31  ;;  %2599 = vmatprep.subr.bf16.mxu0 %v4103_v29 }
  0xa3   :  { %2149 = vmatmul.mubr.f32.gmra.mrb[14].mxu1 %v3413_v50  ;;  %2341 = vmatmul.mubr.f32.gmra.mrb[14].mxu0 %v3413_v50 }
  0xa4   :  { %2150 = vmatprep.mubr.f32.mxu1 %v3424_v38  ;;  %2342 = vmatprep.mubr.f32.mxu0 %v3424_v38 }
  0xa7   :  { %2151 = vmatmul.mubr.f32.gmra.mrb[16].mxu1 %v3424_v38  ;;  %2343 = vmatmul.mubr.f32.gmra.mrb[16].mxu0 %v3424_v38 }
  0xa8   :  { %2505 = vmatpush3.bf16.xpose.msra.mxu1 %v4104_v61  ;;  %2601 = vmatpush3.bf16.xpose.msra.mxu0 %v4105_v63 }
  0xa9   :  { %2152 = vmatprep.mubr.f32.mxu1 %v3475_v40  ;;  %2344 = vmatprep.mubr.f32.mxu0 %v3475_v40 }
  0xaa   :  { %2507 = vmatprep.subr.bf16.mxu1 %v4107_v0  ;;  %2603 = vmatprep.subr.bf16.mxu0 %v4108_v34 }
  0xab   :  { %2153 = vmatmul.mubr.f32.gmra.mrb[18].mxu1 %v3475_v40  ;;  %2345 = vmatmul.mubr.f32.gmra.mrb[18].mxu0 %v3475_v40 }
  0xac   :  { %2154 = vmatprep.mubr.f32.mxu1 %v4109_v47  ;;  %2346 = vmatprep.mubr.f32.mxu0 %v4109_v47 }
  0xaf   :  { %2155 = vmatmul.mubr.f32.gmra.mrb[20].mxu1 %v4109_v47  ;;  %2347 = vmatmul.mubr.f32.gmra.mrb[20].mxu0 %v4109_v47 }
  0xb0   :  { %2509 = vmatpush3.bf16.xpose.msra.mxu1 %v4112_v9  ;;  %2605 = vmatpush3.bf16.xpose.msra.mxu0 %v4113_v39 }
  0xb1   :  { %2156 = vmatprep.mubr.f32.mxu1 %v4114_v53  ;;  %2348 = vmatprep.mubr.f32.mxu0 %v4114_v53 }
  0xb2   :  { %2511 = vmatprep.subr.bf16.mxu1 %v4116_v41  ;;  %2607 = vmatprep.subr.bf16.mxu0 %v4117_v43 }
  0xb3   :  { %2157 = vmatmul.mubr.f32.gmra.mrb[22].mxu1 %v4114_v53  ;;  %2349 = vmatmul.mubr.f32.gmra.mrb[22].mxu0 %v4114_v53 }
  0xb4   :  { %2158 = vmatprep.mubr.f32.mxu1 %v4118_v59  ;;  %2350 = vmatprep.mubr.f32.mxu0 %v4118_v59 }
  0xb7   :  { %2159 = vmatmul.mubr.f32.gmra.mrb[24].mxu1 %v4118_v59  ;;  %2351 = vmatmul.mubr.f32.gmra.mrb[24].mxu0 %v4118_v59 }
  0xb8   :  { %2513 = vmatpush3.bf16.xpose.msra.mxu1 %v4119_v8  ;;  %2609 = vmatpush3.bf16.xpose.msra.mxu0 %v4120_v52 }
  0xb9   :  { %2160 = vmatprep.mubr.f32.mxu1 %v4121_v28  ;;  %2352 = vmatprep.mubr.f32.mxu0 %v4121_v28 }
  0xba   :  { %2515 = vmatprep.subr.bf16.mxu1 %v4122_v57  ;;  %2611 = vmatprep.subr.bf16.mxu0 %v4123_v1 }
  0xbb   :  { %2161 = vmatmul.mubr.f32.gmra.mrb[26].mxu1 %v4121_v28  ;;  %2353 = vmatmul.mubr.f32.gmra.mrb[26].mxu0 %v4121_v28 }
  0xbc   :  { %2162 = vmatprep.mubr.f32.mxu1 %v3625_v22  ;;  %2354 = vmatprep.mubr.f32.mxu0 %v3625_v22 }
  0xbf   :  { %2163 = vmatmul.mubr.f32.gmra.mrb[28].mxu1 %v3625_v22  ;;  %2355 = vmatmul.mubr.f32.gmra.mrb[28].mxu0 %v3625_v22 }
  0xc0   :  { %2517 = vmatpush3.bf16.xpose.msra.mxu1 %v4124_v60  ;;  %2613 = vmatpush3.bf16.xpose.msra.mxu0 %v4125_v48 }
  0xc1   :  { %2164 = vmatprep.mubr.f32.mxu1 %v3645_v14  ;;  %2356 = vmatprep.mubr.f32.mxu0 %v3645_v14 }
  0xc3   :  { %2165 = vmatmul.mubr.f32.gmra.mrb[30].mxu1 %v3645_v14  ;;  %2357 = vmatmul.mubr.f32.gmra.mrb[30].mxu0 %v3645_v14 }
  0xc4   :  { %2198 = vmatprep.mubr.f32.mxu1 %v4126_v49  ;;  %2390 = vmatprep.mubr.f32.mxu0 %v4081_v7 }
  0xc7   :  { %2199 = vmatmul.mubr.f32.vlgmr.msra.gmra.mrb[0].mxu1 %v4126_v49  ;;  %2391 = vmatmul.mubr.f32.vlgmr.msra.gmra.mrb[0].mxu0 %v4081_v7 }
  0xc8   :  { %2200 = vmatprep.mubr.f32.mxu1 %v4127_v25  ;;  %2392 = vmatprep.mubr.f32.mxu0 %v4084_v46 }
  0xcb   :  { %2201 = vmatmul.mubr.f32.gmra.mrb[2].mxu1 %v4127_v25  ;;  %2393 = vmatmul.mubr.f32.gmra.mrb[2].mxu0 %v4084_v46 }
  0xcc   :  { %2202 = vmatprep.mubr.f32.mxu1 %v4128_v17  ;;  %2394 = vmatprep.mubr.f32.mxu0 %v4087_v33 }
  0xcf   :  { %2203 = vmatmul.mubr.f32.gmra.mrb[4].mxu1 %v4128_v17  ;;  %2395 = vmatmul.mubr.f32.gmra.mrb[4].mxu0 %v4087_v33 }
  0xd0   :  { %2204 = vmatprep.mubr.f32.mxu1 %v4129_v5  ;;  %2396 = vmatprep.mubr.f32.mxu0 %v4090_v3 }
  0xd3   :  { %2205 = vmatmul.mubr.f32.gmra.mrb[6].mxu1 %v4129_v5  ;;  %2397 = vmatmul.mubr.f32.gmra.mrb[6].mxu0 %v4090_v3 }
  0xd4   :  { %2206 = vmatprep.mubr.f32.mxu1 %v4130_v62  ;;  %2398 = vmatprep.mubr.f32.mxu0 %v4093_v51 }
  0xd7   :  { %2207 = vmatmul.mubr.f32.gmra.mrb[8].mxu1 %v4130_v62  ;;  %2399 = vmatmul.mubr.f32.gmra.mrb[8].mxu0 %v4093_v51 }
  0xd8   :  { %2208 = vmatprep.mubr.f32.mxu1 %v4131_v55  ;;  %2400 = vmatprep.mubr.f32.mxu0 %v4096_v16 }
  0xdb   :  { %2209 = vmatmul.mubr.f32.gmra.mrb[10].mxu1 %v4131_v55  ;;  %2401 = vmatmul.mubr.f32.gmra.mrb[10].mxu0 %v4096_v16 }
  0xdc   :  { %2210 = vmatprep.mubr.f32.mxu1 %v4132_v15  ;;  %2402 = vmatprep.mubr.f32.mxu0 %v4099_v13 }
  0xdf   :  { %2211 = vmatmul.mubr.f32.gmra.mrb[12].mxu1 %v4132_v15  ;;  %2403 = vmatmul.mubr.f32.gmra.mrb[12].mxu0 %v4099_v13 }
  0xe0   :  { %2212 = vmatprep.mubr.f32.mxu1 %v4133_v32  ;;  %2404 = vmatprep.mubr.f32.mxu0 %v3413_v50 }
  0xe3   :  { %2213 = vmatmul.mubr.f32.gmra.mrb[14].mxu1 %v4133_v32  ;;  %2405 = vmatmul.mubr.f32.gmra.mrb[14].mxu0 %v3413_v50  ;;  %v4137_v50 = vld [vmem:[#allocation32_spill] sm:$0xff] }
  0xe4   :  { %2214 = vmatprep.mubr.f32.mxu1 %v4134_v2  ;;  %2406 = vmatprep.mubr.f32.mxu0 %v3424_v38 }
  0xe7   :  { %2215 = vmatmul.mubr.f32.gmra.mrb[16].mxu1 %v4134_v2  ;;  %2407 = vmatmul.mubr.f32.gmra.mrb[16].mxu0 %v3424_v38  ;;  %v4138_v38 = vld [vmem:[#allocation44_spill] sm:$0xff] }
  0xe8   :  { %2216 = vmatprep.mubr.f32.mxu1 %v4135_v6  ;;  %2408 = vmatprep.mubr.f32.mxu0 %v3475_v40 }
  0xeb   :  { %2217 = vmatmul.mubr.f32.gmra.mrb[18].mxu1 %v4135_v6  ;;  %2409 = vmatmul.mubr.f32.gmra.mrb[18].mxu0 %v3475_v40 }
  0xec   :  { %2218 = vmatprep.mubr.f32.mxu1 %v4136_v37  ;;  %2410 = vmatprep.mubr.f32.mxu0 %v4109_v47 }
  0xef   :  { %2219 = vmatmul.mubr.f32.gmra.mrb[20].mxu1 %v4136_v37  ;;  %2411 = vmatmul.mubr.f32.gmra.mrb[20].mxu0 %v4109_v47 }
  0xf0   :  { %2220 = vmatprep.mubr.f32.mxu1 %v4137_v50  ;;  %2412 = vmatprep.mubr.f32.mxu0 %v4114_v53 }
  0xf3   :  { %2221 = vmatmul.mubr.f32.gmra.mrb[22].mxu1 %v4137_v50  ;;  %2413 = vmatmul.mubr.f32.gmra.mrb[22].mxu0 %v4114_v53 }
  0xf4   :  { %2222 = vmatprep.mubr.f32.mxu1 %v4138_v38  ;;  %2414 = vmatprep.mubr.f32.mxu0 %v4118_v59 }
  0xf7   :  { %2223 = vmatmul.mubr.f32.gmra.mrb[24].mxu1 %v4138_v38  ;;  %2415 = vmatmul.mubr.f32.gmra.mrb[24].mxu0 %v4118_v59 }
  0xf8   :  { %2224 = vmatprep.mubr.f32.mxu1 %v3631_v56  ;;  %2416 = vmatprep.mubr.f32.mxu0 %v4121_v28 }
  0xfb   :  { %2225 = vmatmul.mubr.f32.gmra.mrb[26].mxu1 %v3631_v56  ;;  %2417 = vmatmul.mubr.f32.gmra.mrb[26].mxu0 %v4121_v28 }
  0xfc   :  { %2226 = vmatprep.mubr.f32.mxu1 %v3642_v42  ;;  %2418 = vmatprep.mubr.f32.mxu0 %v3625_v22 }
  0xff   :  { %2227 = vmatmul.mubr.f32.gmra.mrb[28].mxu1 %v3642_v42  ;;  %2419 = vmatmul.mubr.f32.gmra.mrb[28].mxu0 %v3625_v22 }
 0x100   :  { %2228 = vmatprep.mubr.f32.mxu1 %v3658_v20  ;;  %2420 = vmatprep.mubr.f32.mxu0 %v3645_v14 }
 0x103   :  { %2229 = vmatmul.mubr.f32.gmra.mrb[30].mxu1 %v3658_v20  ;;  %2421 = vmatmul.mubr.f32.gmra.mrb[30].mxu0 %v3645_v14 }
 0x19a   :  { %v946_v40 = vpop.f32.mrb[0].mxu1  ;;  %v1684_v56 = vpop.f32.mrb[0].mxu0 }
 0x19b   :  { %v2614_v7 = vadd.f32 %v1684_v56, %v946_v40  ;;  %v948_v54 = vpop.f32.mrb[1].mxu1  ;;  %v1686_v10 = vpop.f32.mrb[1].mxu0 }
 0x19c   :  { %v2615_v46 = vadd.f32 %v1686_v10, %v948_v54 }
 0x19d   :  { %vm1794_vm1 = vcmp.gt.f32.partialorder %v2614_v7, 0.25 }
 0x19e   :  { %v954_v36 = vpop.f32.mrb[2].mxu1  ;;  %v1691_v19 = vpop.f32.mrb[2].mxu0  ;;  %v1810_v42 = vsel %vm1794_vm1, %v2615_v46, 1e+12 }
 0x19f   :  { %v2616_v33 = vadd.f32 %v1691_v19, %v954_v36  ;;  %v1693_v22 = vpop.f32.mrb[3].mxu0  ;;  %1826 = vmin.xlane.f32.xlu0 %v1810_v42  ;;  %v956_v45 = vpop.f32.mrb[3].mxu1 }
 0x1a0   :  { %v2617_v44 = vadd.f32 %v1693_v22, %v956_v45 }
 0x1a1   :  { %vm1795_vm2 = vcmp.gt.f32.partialorder %v2616_v33, 0.25 }
 0x1a2   :  { %v962_v3 = vpop.f32.mrb[4].mxu1  ;;  %v1698_v20 = vpop.f32.mrb[4].mxu0  ;;  %v1811_v11 = vsel %vm1795_vm2, %v2617_v44, 1e+12 }
 0x1a3   :  { %v2618_v14 = vadd.f32 %v1698_v20, %v962_v3  ;;  %v1700_v18 = vpop.f32.mrb[5].mxu0  ;;  %1828 = vmin.xlane.f32.xlu0 %v1811_v11  ;;  %v964_v51 = vpop.f32.mrb[5].mxu1 }
 0x1a4   :  { %v2619_v12 = vadd.f32 %v1700_v18, %v964_v51 }
 0x1a5   :  { %vm1796_vm3 = vcmp.gt.f32.partialorder %v2618_v14, 0.25 }
 0x1a6   :  { %v970_v23 = vpop.f32.mrb[6].mxu1  ;;  %v1705_v16 = vpop.f32.mrb[6].mxu0  ;;  %v1812_v21 = vsel %vm1796_vm3, %v2619_v12, 1e+12 }
 0x1a7   :  { %v2620_v58 = vadd.f32 %v1705_v16, %v970_v23  ;;  %v1707_v13 = vpop.f32.mrb[7].mxu0  ;;  %1830 = vmin.xlane.f32.xlu1 %v1812_v21  ;;  %v972_v24 = vpop.f32.mrb[7].mxu1 }
 0x1a8   :  { %v2621_v30 = vadd.f32 %v1707_v13, %v972_v24 }
 0x1a9   :  { %vm1797_vm4 = vcmp.gt.f32.partialorder %v2620_v58, 0.25 }
 0x1aa   :  { %v978_v31 = vpop.f32.mrb[8].mxu1  ;;  %v1712_v29 = vpop.f32.mrb[8].mxu0  ;;  %v1813_v61 = vsel %vm1797_vm4, %v2621_v30, 1e+12 }
 0x1ab   :  { %v2622_v63 = vadd.f32 %v1712_v29, %v978_v31  ;;  %v1714_v4 = vpop.f32.mrb[9].mxu0  ;;  %1832 = vmin.xlane.f32.xlu1 %v1813_v61  ;;  %v980_v0 = vpop.f32.mrb[9].mxu1 }
 0x1ac   :  { %v2623_v34 = vadd.f32 %v1714_v4, %v980_v0 }
 0x1ad   :  { %vm1798_vm5 = vcmp.gt.f32.partialorder %v2622_v63, 0.25 }
 0x1ae   :  { %v986_v47 = vpop.f32.mrb[10].mxu1  ;;  %v1719_v26 = vpop.f32.mrb[10].mxu0  ;;  %v1814_v35 = vsel %vm1798_vm5, %v2623_v34, 1e+12 }
 0x1af   :  { %v2624_v9 = vadd.f32 %v1719_v26, %v986_v47  ;;  %v1721_v39 = vpop.f32.mrb[11].mxu0  ;;  %1834 = vmin.xlane.f32.xlu0 %v1814_v35  ;;  %v988_v53 = vpop.f32.mrb[11].mxu1 }
 0x1b0   :  { %v2625_v27 = vadd.f32 %v1721_v39, %v988_v53 }
 0x1b1   :  { %vm1799_vm6 = vcmp.gt.f32.partialorder %v2624_v9, 0.25 }
 0x1b2   :  { %v994_v41 = vpop.f32.mrb[12].mxu1  ;;  %v1726_v43 = vpop.f32.mrb[12].mxu0  ;;  %v1815_v59 = vsel %vm1799_vm6, %v2625_v27, 1e+12 }
 0x1b3   :  { %v2626_v8 = vadd.f32 %v1726_v43, %v994_v41  ;;  %v1728_v52 = vpop.f32.mrb[13].mxu0  ;;  %1836 = vmin.xlane.f32.xlu1 %v1815_v59  ;;  %v996_v28 = vpop.f32.mrb[13].mxu1 }
 0x1b4   :  { %v2627_v57 = vadd.f32 %v1728_v52, %v996_v28 }
 0x1b5   :  { %vm1800_vm7 = vcmp.gt.f32.partialorder %v2626_v8, 0.25 }
 0x1b6   :  { %v1002_v1 = vpop.f32.mrb[14].mxu1  ;;  %v1733_v60 = vpop.f32.mrb[14].mxu0  ;;  %v1816_v48 = vsel %vm1800_vm7, %v2627_v57, 1e+12 }
 0x1b7   :  { %v2628_v49 = vadd.f32 %v1733_v60, %v1002_v1  ;;  %v1735_v25 = vpop.f32.mrb[15].mxu0  ;;  %1838 = vmin.xlane.f32.xlu0 %v1816_v48  ;;  %v1004_v17 = vpop.f32.mrb[15].mxu1 }
 0x1b8   :  { %v2629_v5 = vadd.f32 %v1735_v25, %v1004_v17 }
 0x1b9   :  { %vm1801_vm8 = vcmp.gt.f32.partialorder %v2628_v49, 0.25 }
 0x1ba   :  { %v1010_v62 = vpop.f32.mrb[16].mxu1  ;;  %v1740_v55 = vpop.f32.mrb[16].mxu0  ;;  %v1817_v15 = vsel %vm1801_vm8, %v2629_v5, 1e+12 }
 0x1bb   :  { %v2630_v32 = vadd.f32 %v1740_v55, %v1010_v62  ;;  %v1742_v2 = vpop.f32.mrb[17].mxu0  ;;  %1840 = vmin.xlane.f32.xlu1 %v1817_v15  ;;  %v1012_v6 = vpop.f32.mrb[17].mxu1 }
 0x1bc   :  { %v2631_v37 = vadd.f32 %v1742_v2, %v1012_v6 }
 0x1bd   :  { %vm1802_vm9 = vcmp.gt.f32.partialorder %v2630_v32, 0.25 }
 0x1be   :  { %v1018_v50 = vpop.f32.mrb[18].mxu1  ;;  %v1747_v38 = vpop.f32.mrb[18].mxu0  ;;  %v1818_v40 = vsel %vm1802_vm9, %v2631_v37, 1e+12 }
 0x1bf   :  { %v2632_v56 = vadd.f32 %v1747_v38, %v1018_v50  ;;  %v1749_v7 = vpop.f32.mrb[19].mxu0  ;;  %1842 = vmin.xlane.f32.xlu0 %v1818_v40  ;;  %v1020_v54 = vpop.f32.mrb[19].mxu1 }
 0x1c0   :  { %v2633_v10 = vadd.f32 %v1749_v7, %v1020_v54 }
 0x1c1   :  { %vm1803_vm10 = vcmp.gt.f32.partialorder %v2632_v56, 0.25 }
 0x1c2   :  { %v1026_v46 = vpop.f32.mrb[20].mxu1  ;;  %v1754_v36 = vpop.f32.mrb[20].mxu0  ;;  %v1819_v19 = vsel %vm1803_vm10, %v2633_v10, 1e+12 }
 0x1c3   :  { %v2634_v42 = vadd.f32 %v1754_v36, %v1026_v46  ;;  %v1756_v33 = vpop.f32.mrb[21].mxu0  ;;  %1844 = vmin.xlane.f32.xlu1 %v1819_v19  ;;  %v1028_v22 = vpop.f32.mrb[21].mxu1 }
 0x1c4   :  { %v2635_v45 = vadd.f32 %v1756_v33, %v1028_v22 }
 0x1c5   :  { %vm1804_vm11 = vcmp.gt.f32.partialorder %v2634_v42, 0.25 }
 0x1c6   :  { %v1034_v44 = vpop.f32.mrb[22].mxu1  ;;  %v1761_v3 = vpop.f32.mrb[22].mxu0  ;;  %v1820_v20 = vsel %vm1804_vm11, %v2635_v45, 1e+12 }
 0x1c7   :  { %v2636_v11 = vadd.f32 %v1761_v3, %v1034_v44  ;;  %v1763_v14 = vpop.f32.mrb[23].mxu0  ;;  %1846 = vmin.xlane.f32.xlu0 %v1820_v20  ;;  %v1036_v18 = vpop.f32.mrb[23].mxu1 }
 0x1c8   :  { %v2637_v51 = vadd.f32 %v1763_v14, %v1036_v18 }
 0x1c9   :  { %vm1805_vm12 = vcmp.gt.f32.partialorder %v2636_v11, 0.25 }
 0x1ca   :  { %v1042_v12 = vpop.f32.mrb[24].mxu1  ;;  %v1768_v23 = vpop.f32.mrb[24].mxu0  ;;  %v1821_v16 = vsel %vm1805_vm12, %v2637_v51, 1e+12 }
 0x1cb   :  { %v2638_v21 = vadd.f32 %v1768_v23, %v1042_v12  ;;  %v1770_v58 = vpop.f32.mrb[25].mxu0  ;;  %1848 = vmin.xlane.f32.xlu1 %v1821_v16  ;;  %v1044_v13 = vpop.f32.mrb[25].mxu1 }
 0x1cc   :  { %v2639_v24 = vadd.f32 %v1770_v58, %v1044_v13 }
 0x1cd   :  { %vm1806_vm13 = vcmp.gt.f32.partialorder %v2638_v21, 0.25 }
 0x1ce   :  { %v1050_v30 = vpop.f32.mrb[26].mxu1  ;;  %v1775_v31 = vpop.f32.mrb[26].mxu0  ;;  %v1822_v29 = vsel %vm1806_vm13, %v2639_v24, 1e+12 }
 0x1cf   :  { %v2640_v61 = vadd.f32 %v1775_v31, %v1050_v30  ;;  %v1777_v63 = vpop.f32.mrb[27].mxu0  ;;  %1850 = vmin.xlane.f32.xlu0 %v1822_v29  ;;  %v1052_v4 = vpop.f32.mrb[27].mxu1 }
 0x1d0   :  { %v2641_v0 = vadd.f32 %v1777_v63, %v1052_v4 }
 0x1d1   :  { %vm1807_vm14 = vcmp.gt.f32.partialorder %v2640_v61, 0.25 }
 0x1d2   :  { %v1058_v34 = vpop.f32.mrb[28].mxu1  ;;  %v1782_v47 = vpop.f32.mrb[28].mxu0  ;;  %v1823_v26 = vsel %vm1807_vm14, %v2641_v0, 1e+12 }
 0x1d3   :  { %v2642_v35 = vadd.f32 %v1782_v47, %v1058_v34  ;;  %v1784_v9 = vpop.f32.mrb[29].mxu0  ;;  %1852 = vmin.xlane.f32.xlu1 %v1823_v26  ;;  %v1060_v39 = vpop.f32.mrb[29].mxu1 }
 0x1d4   :  { %v2643_v53 = vadd.f32 %v1784_v9, %v1060_v39 }
 0x1d5   :  { %vm1808_vm15 = vcmp.gt.f32.partialorder %v2642_v35, 0.25 }
 0x1d6   :  { %v1066_v27 = vpop.f32.mrb[30].mxu1  ;;  %v1789_v41 = vpop.f32.mrb[30].mxu0  ;;  %v1824_v43 = vsel %vm1808_vm15, %v2643_v53, 1e+12 }
 0x1d7   :  { %v2644_v59 = vadd.f32 %v1789_v41, %v1066_v27  ;;  %v1791_v8 = vpop.f32.mrb[31].mxu0  ;;  %1854 = vmin.xlane.f32.xlu0 %v1824_v43  ;;  %v1068_v52 = vpop.f32.mrb[31].mxu1 }
 0x1d8   :  { %v2645_v28 = vadd.f32 %v1791_v8, %v1068_v52 }
 0x1d9   :  { %vm1809_vm0 = vcmp.gt.f32.partialorder %v2644_v59, 0.25 }
 0x1da   :  { %v1825_v57 = vsel %vm1809_vm0, %v2645_v28, 1e+12 }
 0x1db   :  { %1856 = vmin.xlane.f32.xlu1 %v1825_v57 }
 0x22c   :  { %v1827_v1 = vpop.xlane.xlu0 %1826 }
 0x22d   :  { %v1858_v60 = vmax.f32 %v1827_v1, 0.0 }
 0x22f   :  { %2774 = vrsqrt.f32 %v1858_v60  ;;  %vm1876_vm1 = vcmp.eq.f32.partialorder %v1858_v60, inf  ;;  %v1879_v32 = vand.u32 2147483648, %v1858_v60  ;;  %vm1878_vm2 = vcmp.eq.f32.partialorder %v1858_v60, 0.0 }
 0x230   :  { %v1829_v48 = vpop.xlane.xlu0 %1828 }
 0x231   :  { %v1859_v49 = vmax.f32 %v1829_v48, 0.0 }
 0x233   :  { %2776 = vrsqrt.f32 %v1859_v49  ;;  %vm1883_vm3 = vcmp.eq.f32.partialorder %v1859_v49, inf  ;;  %v1886_v7 = vand.u32 2147483648, %v1859_v49  ;;  %vm1885_vm4 = vcmp.eq.f32.partialorder %v1859_v49, 0.0 }
 0x234   :  { %v1831_v25 = vpop.xlane.xlu1 %1830 }
 0x235   :  { %v1860_v17 = vmax.f32 %v1831_v25, 0.0 }
 0x237   :  { %2778 = vrsqrt.f32 %v1860_v17  ;;  %vm1890_vm5 = vcmp.eq.f32.partialorder %v1860_v17, inf  ;;  %v1893_v45 = vand.u32 2147483648, %v1860_v17  ;;  %vm1892_vm6 = vcmp.eq.f32.partialorder %v1860_v17, 0.0 }
 0x238   :  { %v1833_v5 = vpop.xlane.xlu1 %1832 }
 0x239   :  { %v2775_v62 = vpop.eup %2774  ;;  %v1861_v55 = vmax.f32 %v1833_v5, 0.0 }
 0x23a   :  { %v1875_v15 = vmul.f32 %v2775_v62, %v1858_v60 }
 0x23b   :  { %2780 = vrsqrt.f32 %v1861_v55  ;;  %vm1897_vm7 = vcmp.eq.f32.partialorder %v1861_v55, inf  ;;  %v1900_v23 = vand.u32 2147483648, %v1861_v55  ;;  %vm1899_vm8 = vcmp.eq.f32.partialorder %v1861_v55, 0.0 }
 0x23c   :  { %v1877_v2 = vsel %vm1876_vm1, %v1858_v60, %v1875_v15  ;;  %v1835_v6 = vpop.xlane.xlu0 %1834 }
 0x23d   :  { %v2777_v37 = vpop.eup %2776  ;;  %v1880_v50 = vsel %vm1878_vm2, %v1879_v32, %v1877_v2  ;;  %v1862_v38 = vmax.f32 %v1835_v6, 0.0 }
 0x23e   :  { %v1986_v40 = vsub.f32 1.4, %v1880_v50  ;;  %v1882_v56 = vmul.f32 %v2777_v37, %v1859_v49 }
 0x23f   :  { %2782 = vrsqrt.f32 %v1862_v38  ;;  %vm1904_vm9 = vcmp.eq.f32.partialorder %v1862_v38, inf  ;;  %v1907_v61 = vand.u32 2147483648, %v1862_v38  ;;  %vm1906_vm10 = vcmp.eq.f32.partialorder %v1862_v38, 0.0 }
 0x240   :  { %v2002_v54 = vmax.f32 %v1986_v40, 0.0  ;;  %v1884_v10 = vsel %vm1883_vm3, %v1859_v49, %v1882_v56  ;;  %v1837_v46 = vpop.xlane.xlu1 %1836 }
 0x241   :  { %v2779_v36 = vpop.eup %2778  ;;  %v1887_v19 = vsel %vm1885_vm4, %v1886_v7, %v1884_v10  ;;  %v1863_v42 = vmax.f32 %v1837_v46, 0.0 }
 0x242   :  { %2018 = vst [vmem:[%s3908_s2] sm:$0xff] %v2002_v54  ;;  %v1987_v33 = vsub.f32 1.4, %v1887_v19  ;;  %v1889_v22 = vmul.f32 %v2779_v36, %v1860_v17 }
 0x243   :  { %2784 = vrsqrt.f32 %v1863_v42  ;;  %vm1911_vm11 = vcmp.eq.f32.partialorder %v1863_v42, inf  ;;  %v1914_v39 = vand.u32 2147483648, %v1863_v42  ;;  %vm1913_vm12 = vcmp.eq.f32.partialorder %v1863_v42, 0.0 }
 0x244   :  { %v2003_v44 = vmax.f32 %v1987_v33, 0.0  ;;  %v1891_v3 = vsel %vm1890_vm5, %v1860_v17, %v1889_v22  ;;  %v1839_v20 = vpop.xlane.xlu0 %1838 }
 0x245   :  { %v2781_v11 = vpop.eup %2780  ;;  %v1894_v14 = vsel %vm1892_vm6, %v1893_v45, %v1891_v3  ;;  %v1864_v18 = vmax.f32 %v1839_v20, 0.0 }
 0x246   :  { %2019 = vst [vmem:[%s3908_s2 + $0x8] sm:$0xff] %v2003_v44  ;;  %v1988_v51 = vsub.f32 1.4, %v1894_v14  ;;  %v1896_v12 = vmul.f32 %v2781_v11, %v1861_v55 }
 0x247   :  { %2786 = vrsqrt.f32 %v1864_v18  ;;  %vm1918_vm13 = vcmp.eq.f32.partialorder %v1864_v18, inf  ;;  %v1921_v57 = vand.u32 2147483648, %v1864_v18  ;;  %vm1920_vm14 = vcmp.eq.f32.partialorder %v1864_v18, 0.0 }
 0x248   :  { %v2004_v16 = vmax.f32 %v1988_v51, 0.0  ;;  %v1898_v21 = vsel %vm1897_vm7, %v1861_v55, %v1896_v12  ;;  %v1841_v58 = vpop.xlane.xlu1 %1840 }
 0x249   :  { %v2783_v13 = vpop.eup %2782  ;;  %v1901_v24 = vsel %vm1899_vm8, %v1900_v23, %v1898_v21  ;;  %v1865_v30 = vmax.f32 %v1841_v58, 0.0 }
 0x24a   :  { %2020 = vst [vmem:[%s3908_s2 + $0x10] sm:$0xff] %v2004_v16  ;;  %v1989_v31 = vsub.f32 1.4, %v1901_v24  ;;  %v1903_v29 = vmul.f32 %v2783_v13, %v1862_v38 }
 0x24b   :  { %2788 = vrsqrt.f32 %v1865_v30  ;;  %vm1925_vm15 = vcmp.eq.f32.partialorder %v1865_v30, inf  ;;  %v1928_v55 = vand.u32 2147483648, %v1865_v30  ;;  %vm1927_vm0 = vcmp.eq.f32.partialorder %v1865_v30, 0.0 }
 0x24c   :  { %v2005_v63 = vmax.f32 %v1989_v31, 0.0  ;;  %v1905_v4 = vsel %vm1904_vm9, %v1862_v38, %v1903_v29  ;;  %v1843_v0 = vpop.xlane.xlu0 %1842 }
 0x24d   :  { %v2785_v34 = vpop.eup %2784  ;;  %v1908_v47 = vsel %vm1906_vm10, %v1907_v61, %v1905_v4  ;;  %v1866_v26 = vmax.f32 %v1843_v0, 0.0 }
 0x24e   :  { %2021 = vst [vmem:[%s3908_s2 + $0x18] sm:$0xff] %v2005_v63  ;;  %v1990_v35 = vsub.f32 1.4, %v1908_v47  ;;  %v1910_v9 = vmul.f32 %v2785_v34, %v1863_v42 }
 0x24f   :  { %2790 = vrsqrt.f32 %v1866_v26  ;;  %vm1932_vm1 = vcmp.eq.f32.partialorder %v1866_v26, inf  ;;  %v1935_v56 = vand.u32 2147483648, %v1866_v26  ;;  %vm1934_vm2 = vcmp.eq.f32.partialorder %v1866_v26, 0.0 }
 0x250   :  { %v2006_v53 = vmax.f32 %v1990_v35, 0.0  ;;  %v1912_v27 = vsel %vm1911_vm11, %v1863_v42, %v1910_v9  ;;  %v1845_v41 = vpop.xlane.xlu1 %1844 }
 0x251   :  { %v2787_v43 = vpop.eup %2786  ;;  %v1915_v59 = vsel %vm1913_vm12, %v1914_v39, %v1912_v27  ;;  %v1867_v8 = vmax.f32 %v1845_v41, 0.0 }
 0x252   :  { %2022 = vst [vmem:[%s3908_s2 + $0x20] sm:$0xff] %v2006_v53  ;;  %v1991_v52 = vsub.f32 1.4, %v1915_v59  ;;  %v1917_v28 = vmul.f32 %v2787_v43, %v1864_v18 }
 0x253   :  { %2792 = vrsqrt.f32 %v1867_v8  ;;  %vm1939_vm3 = vcmp.eq.f32.partialorder %v1867_v8, inf  ;;  %v1942_v22 = vand.u32 2147483648, %v1867_v8  ;;  %vm1941_vm4 = vcmp.eq.f32.partialorder %v1867_v8, 0.0 }
 0x254   :  { %v2007_v1 = vmax.f32 %v1991_v52, 0.0  ;;  %v1919_v60 = vsel %vm1918_vm13, %v1864_v18, %v1917_v28  ;;  %v1847_v48 = vpop.xlane.xlu0 %1846 }
 0x255   :  { %v2789_v49 = vpop.eup %2788  ;;  %v1922_v25 = vsel %vm1920_vm14, %v1921_v57, %v1919_v60  ;;  %v1868_v17 = vmax.f32 %v1847_v48, 0.0 }
 0x256   :  { %2023 = vst [vmem:[%s3908_s2 + $0x28] sm:$0xff] %v2007_v1  ;;  %v1992_v5 = vsub.f32 1.4, %v1922_v25  ;;  %v1924_v62 = vmul.f32 %v2789_v49, %v1865_v30 }
 0x257   :  { %2794 = vrsqrt.f32 %v1868_v17  ;;  %vm1946_vm5 = vcmp.eq.f32.partialorder %v1868_v17, inf  ;;  %v1949_v12 = vand.u32 2147483648, %v1868_v17  ;;  %vm1948_vm6 = vcmp.eq.f32.partialorder %v1868_v17, 0.0 }
 0x258   :  { %v2008_v15 = vmax.f32 %v1992_v5, 0.0  ;;  %v1926_v32 = vsel %vm1925_vm15, %v1865_v30, %v1924_v62  ;;  %v1849_v2 = vpop.xlane.xlu1 %1848 }
 0x259   :  { %v2791_v6 = vpop.eup %2790  ;;  %v1929_v37 = vsel %vm1927_vm0, %v1928_v55, %v1926_v32  ;;  %v1869_v50 = vmax.f32 %v1849_v2, 0.0 }
 0x25a   :  { %2024 = vst [vmem:[%s3908_s2 + $0x30] sm:$0xff] %v2008_v15  ;;  %v1993_v38 = vsub.f32 1.4, %v1929_v37  ;;  %v1931_v40 = vmul.f32 %v2791_v6, %v1866_v26 }
 0x25b   :  { %2796 = vrsqrt.f32 %v1869_v50  ;;  %vm1953_vm7 = vcmp.eq.f32.partialorder %v1869_v50, inf  ;;  %v1956_v29 = vand.u32 2147483648, %v1869_v50  ;;  %vm1955_vm8 = vcmp.eq.f32.partialorder %v1869_v50, 0.0 }
 0x25c   :  { %v2009_v7 = vmax.f32 %v1993_v38, 0.0  ;;  %v1933_v54 = vsel %vm1932_vm1, %v1866_v26, %v1931_v40  ;;  %v1851_v10 = vpop.xlane.xlu0 %1850 }
 0x25d   :  { %v2793_v46 = vpop.eup %2792  ;;  %v1936_v36 = vsel %vm1934_vm2, %v1935_v56, %v1933_v54  ;;  %v1870_v19 = vmax.f32 %v1851_v10, 0.0 }
 0x25e   :  { %2025 = vst [vmem:[%s3908_s2 + $0x38] sm:$0xff] %v2009_v7  ;;  %v1994_v42 = vsub.f32 1.4, %v1936_v36  ;;  %v1938_v33 = vmul.f32 %v2793_v46, %v1867_v8 }
 0x25f   :  { %2798 = vrsqrt.f32 %v1870_v19  ;;  %vm1960_vm9 = vcmp.eq.f32.partialorder %v1870_v19, inf  ;;  %v1963_v9 = vand.u32 2147483648, %v1870_v19  ;;  %vm1962_vm10 = vcmp.eq.f32.partialorder %v1870_v19, 0.0 }
 0x260   :  { %v2010_v45 = vmax.f32 %v1994_v42, 0.0  ;;  %v1940_v44 = vsel %vm1939_vm3, %v1867_v8, %v1938_v33  ;;  %v1853_v3 = vpop.xlane.xlu1 %1852 }
 0x261   :  { %v2795_v20 = vpop.eup %2794  ;;  %v1943_v11 = vsel %vm1941_vm4, %v1942_v22, %v1940_v44  ;;  %v1871_v14 = vmax.f32 %v1853_v3, 0.0 }
 0x262   :  { %2026 = vst [vmem:[%s3908_s2 + $0x40] sm:$0xff] %v2010_v45  ;;  %v1995_v18 = vsub.f32 1.4, %v1943_v11  ;;  %v1945_v51 = vmul.f32 %v2795_v20, %v1868_v17 }
 0x263   :  { %2800 = vrsqrt.f32 %v1871_v14  ;;  %vm1967_vm11 = vcmp.eq.f32.partialorder %v1871_v14, inf  ;;  %v1970_v8 = vand.u32 2147483648, %v1871_v14  ;;  %vm1969_vm12 = vcmp.eq.f32.partialorder %v1871_v14, 0.0 }
 0x264   :  { %v2011_v23 = vmax.f32 %v1995_v18, 0.0  ;;  %v1947_v16 = vsel %vm1946_vm5, %v1868_v17, %v1945_v51  ;;  %v1855_v21 = vpop.xlane.xlu0 %1854 }
 0x265   :  { %v2797_v58 = vpop.eup %2796  ;;  %v1950_v13 = vsel %vm1948_vm6, %v1949_v12, %v1947_v16  ;;  %v1872_v24 = vmax.f32 %v1855_v21, 0.0 }
 0x266   :  { %2027 = vst [vmem:[%s3908_s2 + $0x48] sm:$0xff] %v2011_v23  ;;  %v1996_v30 = vsub.f32 1.4, %v1950_v13  ;;  %v1952_v31 = vmul.f32 %v2797_v58, %v1869_v50 }
 0x267   :  { %2802 = vrsqrt.f32 %v1872_v24  ;;  %vm1974_vm13 = vcmp.eq.f32.partialorder %v1872_v24, inf  ;;  %v1977_v49 = vand.u32 2147483648, %v1872_v24  ;;  %vm1976_vm14 = vcmp.eq.f32.partialorder %v1872_v24, 0.0 }
 0x268   :  { %v2012_v61 = vmax.f32 %v1996_v30, 0.0  ;;  %v1954_v63 = vsel %vm1953_vm7, %v1869_v50, %v1952_v31  ;;  %v1857_v4 = vpop.xlane.xlu1 %1856 }
 0x269   :  { %v2799_v0 = vpop.eup %2798  ;;  %v1957_v34 = vsel %vm1955_vm8, %v1956_v29, %v1954_v63  ;;  %v1873_v47 = vmax.f32 %v1857_v4, 0.0 }
 0x26a   :  { %2028 = vst [vmem:[%s3908_s2 + $0x50] sm:$0xff] %v2012_v61  ;;  %v1997_v26 = vsub.f32 1.4, %v1957_v34  ;;  %v1959_v35 = vmul.f32 %v2799_v0, %v1870_v19 }
 0x26b   :  { %2804 = vrsqrt.f32 %v1873_v47  ;;  %vm1981_vm15 = vcmp.eq.f32.partialorder %v1873_v47, inf  ;;  %v1984_v32 = vand.u32 2147483648, %v1873_v47  ;;  %vm1983_vm0 = vcmp.eq.f32.partialorder %v1873_v47, 0.0 }
 0x26c   :  { %v2013_v39 = vmax.f32 %v1997_v26, 0.0  ;;  %v1961_v53 = vsel %vm1960_vm9, %v1870_v19, %v1959_v35 }
 0x26d   :  { %v2801_v27 = vpop.eup %2800  ;;  %v1964_v41 = vsel %vm1962_vm10, %v1963_v9, %v1961_v53 }
 0x26e   :  { %2029 = vst [vmem:[%s3908_s2 + $0x58] sm:$0xff] %v2013_v39  ;;  %v1998_v43 = vsub.f32 1.4, %v1964_v41  ;;  %v1966_v59 = vmul.f32 %v2801_v27, %v1871_v14 }
 0x270   :  { %v2014_v52 = vmax.f32 %v1998_v43, 0.0  ;;  %v1968_v28 = vsel %vm1967_vm11, %v1871_v14, %v1966_v59 }
 0x271   :  { %v2803_v57 = vpop.eup %2802  ;;  %v1971_v1 = vsel %vm1969_vm12, %v1970_v8, %v1968_v28 }
 0x272   :  { %2030 = vst [vmem:[%s3908_s2 + $0x60] sm:$0xff] %v2014_v52  ;;  %v1999_v60 = vsub.f32 1.4, %v1971_v1  ;;  %v1973_v48 = vmul.f32 %v2803_v57, %v1872_v24 }
 0x274   :  { %v2015_v25 = vmax.f32 %v1999_v60, 0.0  ;;  %v1975_v17 = vsel %vm1974_vm13, %v1872_v24, %v1973_v48 }
 0x275   :  { %v2805_v5 = vpop.eup %2804  ;;  %v1978_v62 = vsel %vm1976_vm14, %v1977_v49, %v1975_v17 }
 0x276   :  { %2031 = vst [vmem:[%s3908_s2 + $0x68] sm:$0xff] %v2015_v25  ;;  %v2000_v55 = vsub.f32 1.4, %v1978_v62  ;;  %v1980_v15 = vmul.f32 %v2805_v5, %v1873_v47 }
 0x278   :  { %v2016_v2 = vmax.f32 %v2000_v55, 0.0  ;;  %v1982_v6 = vsel %vm1981_vm15, %v1873_v47, %v1980_v15 }
 0x279   :  { %v1985_v37 = vsel %vm1983_vm0, %v1984_v32, %v1982_v6 }
 0x27a   :  { %2032 = vst [vmem:[%s3908_s2 + $0x70] sm:$0xff] %v2016_v2  ;;  %v2001_v50 = vsub.f32 1.4, %v1985_v37 }
 0x27c   :  { %v2017_v38 = vmax.f32 %v2001_v50, 0.0 }
 0x27e   :  { %2033 = vst [vmem:[%s3908_s2 + $0x78] sm:$0xff] %v2017_v38 }

</bundles_post_ra>
